<compile_context>
chip_gen: v6e
topology: v6e:2x2x1
jax: 0.10.0
libtpu: 0.0.40
codegen_flags: <defaults>
</compile_context>

<pallas_src>
import functools
import numpy as np
import jax
import jax.numpy as jnp
from jax.experimental import pallas as pl
from jax.experimental.pallas import tpu as pltpu

H_PAD = 128                     # lane-dense padded hidden width (hidden + edge_dim <= 128)
_NEG_F32 = float(np.finfo(np.float32).min)


def _round_up(x, m):
    return ((x + m - 1) // m) * m


# ---------------------------------------------------------------------------
# Pallas kernels
# ---------------------------------------------------------------------------

def _linear_act_kernel(x_ref, w_ref, b_ref, o_ref, *, activation):
    """y = act(x @ W' + b') with BN folded into W'/b'. bf16 MXU, f32 accumulate."""
    y = jnp.dot(x_ref[...], w_ref[...], preferred_element_type=jnp.float32)
    y = y + b_ref[...]
    if activation == "tanh":
        y = jnp.tanh(y)
    elif activation == "relu":
        y = jnp.maximum(y, 0.0)
    o_ref[...] = y.astype(o_ref.dtype)


def _edge_conv_kernel(op_ref, valid_ref, has_ref, w_ref, b_ref, o_ref, *, tn, epn):
    """EdgeConvWithEdgeAttribute, one destination-node tile per grid step.
       msg = tanh(BN(Linear([x_i, x_j-x_i, e])))  (BN folded, fused K=256 weight)
       out[n] = max over the EPN slots of node n; empty segment -> 0 (PyG fill)."""
    pre = jnp.dot(op_ref[...], w_ref[...], preferred_element_type=jnp.float32)
    msg = jnp.tanh(pre + b_ref[...])                              # (tn*epn, H_PAD) f32
    masked = jnp.where(valid_ref[...] > 0.0, msg, _NEG_F32)
    seg_max = jnp.max(masked.reshape(tn, epn, H_PAD), axis=1)     # (tn, H_PAD)
    o_ref[...] = jnp.where(has_ref[...] > 0.0, seg_max, 0.0).astype(o_ref.dtype)


def _emulsion_kernel(x_ref, op_ref, valid_ref, sel_ref, w_ref, b_ref, o_ref, *, tn, epn):
    """One EmulsionConv order step, one node tile per grid step (global node space).
       msg = ReLU(Linear([x_i, x_j-x_i, e]));  agg = segment-sum by the scatter node
       selected nodes: x <- (x + agg)/2 ; other nodes pass through unchanged."""
    pre = jnp.dot(op_ref[...], w_ref[...], preferred_element_type=jnp.float32)
    msg = jnp.maximum(pre + b_ref[...], 0.0)                      # (tn*epn, H_PAD) f32
    agg = jnp.sum((msg * valid_ref[...]).reshape(tn, epn, H_PAD), axis=1)
    xf = x_ref[...].astype(jnp.float32)
    new_x = jnp.where(sel_ref[...] > 0.0, (xf + agg) * 0.5, xf)
    o_ref[...] = new_x.astype(o_ref.dtype)


# ---------------------------------------------------------------------------
# Layer wrappers (XLA glue: per-edge gathers + pallas_call)
# ---------------------------------------------------------------------------

def fused_linear(x, w_bf16, b_f32, *, activation, row_tile):
    n_pad, din = x.shape
    dout = w_bf16.shape[1]
    return pl.pallas_call(
        functools.partial(_linear_act_kernel, activation=activation),
        out_shape=jax.ShapeDtypeStruct((n_pad, dout), jnp.bfloat16),
        grid=(n_pad // row_tile,),
        in_specs=[
            pl.BlockSpec((row_tile, din), lambda i: (i, 0)),
            pl.BlockSpec((din, dout), lambda i: (0, 0)),
            pl.BlockSpec((1, dout), lambda i: (0, 0)),
        ],
        out_specs=pl.BlockSpec((row_tile, dout), lambda i: (i, 0)),
        compiler_params=pltpu.CompilerParams(dimension_semantics=("parallel",)),
    )(x, w_bf16, b_f32)


def edge_conv_layer(x, graph, ef_emb, w, b, *, tn):
    # PyG flow 'source_to_target': x_i = x[dst], x_j = x[src], aggregate (max) at dst.
    n_pad = x.shape[0]
    epn = graph["epn"]
    ept = tn * epn
    xi = jnp.take(x, graph["dst"], axis=0)            # (n_pad*epn, H_PAD) bf16
    xj = jnp.take(x, graph["src"], axis=0)
    op = jnp.concatenate([xi + ef_emb, xj - xi], axis=1)   # (n_pad*epn, 2*H_PAD) bf16
    return pl.pallas_call(
        functools.partial(_edge_conv_kernel, tn=tn, epn=epn),
        out_shape=jax.ShapeDtypeStruct((n_pad, H_PAD), jnp.bfloat16),
        grid=(n_pad // tn,),
        in_specs=[
            pl.BlockSpec((ept, 2 * H_PAD), lambda t: (t, 0)),   # [x_i + e || x_j - x_i]
            pl.BlockSpec((ept, 1), lambda t: (t, 0)),           # slot validity
            pl.BlockSpec((tn, 1), lambda t: (t, 0)),            # per-node has-edge flag
            pl.BlockSpec((2 * H_PAD, H_PAD), lambda t: (0, 0)),  # fused message weight
            pl.BlockSpec((1, H_PAD), lambda t: (0, 0)),          # bias (BN folded)
        ],
        out_specs=pl.BlockSpec((tn, H_PAD), lambda t: (t, 0)),
        compiler_params=pltpu.CompilerParams(dimension_semantics=("parallel",)),
    )(op, graph["valid"], graph["has"], w, b)


def emulsion_order_step(x, st, ef_emb, w, b, *, tn):
    # EmulsionConv (direction=0): x_j = x[sub[0]], x_i = x[sub[1]], scatter_add by sub[0];
    # selected nodes updated to (x + agg)/2, others unchanged (written in place via alias).
    n_pad = x.shape[0]
    epn = st["epn"]
    ept = tn * epn
    xj = jnp.take(x, st["xj_idx"], axis=0)
    xi = jnp.take(x, st["xi_idx"], axis=0)
    op = jnp.concatenate([xi + ef_emb, xj - xi], axis=1)
    return pl.pallas_call(
        functools.partial(_emulsion_kernel, tn=tn, epn=epn),
        out_shape=jax.ShapeDtypeStruct((n_pad, H_PAD), jnp.bfloat16),
        grid=(n_pad // tn,),
        in_specs=[
            pl.BlockSpec((tn, H_PAD), lambda t: (t, 0)),         # x tile (aliased to out)
            pl.BlockSpec((ept, 2 * H_PAD), lambda t: (t, 0)),    # [x_i + e || x_j - x_i]
            pl.BlockSpec((ept, 1), lambda t: (t, 0)),            # slot validity
            pl.BlockSpec((tn, 1), lambda t: (t, 0)),             # node-selected flag
            pl.BlockSpec((2 * H_PAD, H_PAD), lambda t: (0, 0)),  # fused message weight
            pl.BlockSpec((1, H_PAD), lambda t: (0, 0)),          # bias
        ],
        out_specs=pl.BlockSpec((tn, H_PAD), lambda t: (t, 0)),
        input_output_aliases={0: 0},
        compiler_params=pltpu.CompilerParams(dimension_semantics=("parallel",)),
    )(x, op, st["valid"], st["sel"], w, b)


# ---------------------------------------------------------------------------
# Host-side graph preprocessing: pad edges to EPN slots per (scatter) node
# ---------------------------------------------------------------------------

def _bucket_by_node(node_of_item, n_pad, epn_multiple=8):
    node_of_item = np.asarray(node_of_item, np.int64)
    counts = np.bincount(node_of_item, minlength=n_pad) if node_of_item.size else np.zeros(n_pad, np.int64)
    epn = _round_up(max(1, int(counts.max()) if counts.size else 1), epn_multiple)
    slot = np.zeros((n_pad, epn), np.int64)          # item index per slot (pad -> item 0, masked)
    valid = np.zeros((n_pad, epn), np.float32)
    fill = np.zeros(n_pad, np.int64)
    for k, v in enumerate(node_of_item):
        q = fill[v]
        slot[v, q] = k
        valid[v, q] = 1.0
        fill[v] = q + 1
    return slot.reshape(-1), valid.reshape(-1, 1), epn


def build_edge_conv_tables(edge_index_np, n_pad):
    src = np.asarray(edge_index_np[0], np.int64)
    dst = np.asarray(edge_index_np[1], np.int64)
    slot, valid, epn = _bucket_by_node(dst, n_pad)               # slot holds edge ids
    has = (np.bincount(dst, minlength=n_pad) > 0).astype(np.float32).reshape(-1, 1)
    return dict(src=jnp.asarray(src[slot].astype(np.int32)),
                dst=jnp.asarray(dst[slot].astype(np.int32)),
                edge_id=jnp.asarray(slot.astype(np.int32)),
                valid=jnp.asarray(valid),
                has=jnp.asarray(has),
                epn=int(epn))


def build_order_tables(edge_index_np, orders_np, n_pad):
    """Replicates data.orders_preprocessed in global node space: per order, bucket the
    order's edges by the scatter node sub[0] (direction=0) with EPN slots per node and
    mark the selected nodes (unique(sub)) that receive the (x + agg)/2 update."""
    edge_index_np = np.asarray(edge_index_np, np.int64)
    structs = []
    for order in orders_np:
        e_ids = np.nonzero(np.asarray(order))[0].astype(np.int64)
        if len(e_ids) == 0:                       # PyTorch skips orders with order.sum() == 0
            continue
        sub = edge_index_np[:, e_ids]             # (2, K)
        slot, valid, epn = _bucket_by_node(sub[0], n_pad)
        sel = np.zeros((n_pad, 1), np.float32)
        sel[np.unique(sub)] = 1.0
        structs.append(dict(xj_idx=jnp.asarray(sub[0][slot].astype(np.int32)),  # x_j
                            xi_idx=jnp.asarray(sub[1][slot].astype(np.int32)),  # x_i
                            edge_id=jnp.asarray(e_ids[slot].astype(np.int32)),
                            valid=jnp.asarray(valid),
                            sel=jnp.asarray(sel),
                            epn=int(epn)))
    return structs


# ---------------------------------------------------------------------------
# Parameter init + host-side BN folding into padded bf16 weights
# ---------------------------------------------------------------------------

def init_params(key, input_dim, hidden, edge_dim, output_dim,
                num_layers_emulsion=3, num_layers_edge_conv=3):
    keys = iter(jax.random.split(key, 4 * (num_layers_emulsion + num_layers_edge_conv) + 4))

    def lin(k, din, dout):
        kw, kb = jax.random.split(k)
        w = jax.random.normal(kw, (din, dout), jnp.float32) * (0.5 / np.sqrt(din))
        b = jax.random.normal(kb, (dout,), jnp.float32) * 0.01
        return w, b

    def bn(k, dim):
        k1, k2, k3, k4 = jax.random.split(k, 4)
        gamma = 1.0 + 0.05 * jax.random.normal(k1, (dim,), jnp.float32)
        beta = 0.05 * jax.random.normal(k2, (dim,), jnp.float32)
        mean = 0.1 * jax.random.normal(k3, (dim,), jnp.float32)         # running_mean
        var = 1.0 + 0.1 * jax.random.uniform(k4, (dim,), jnp.float32)   # running_var
        return gamma, beta, mean, var

    params = {"emul_blocks": [], "edge_convs": []}
    prev = input_dim
    for _ in range(num_layers_emulsion):
        mw, mb = lin(next(keys), prev, hidden)
        gamma, beta, mean, var = bn(next(keys), hidden)
        cw, cb = lin(next(keys), 2 * hidden + edge_dim, hidden)
        params["emul_blocks"].append(dict(mlp_w=mw, mlp_b=mb, gamma=gamma, beta=beta,
                                          mean=mean, var=var, conv_w=cw, conv_b=cb))
        prev = hidden
    for _ in range(num_layers_edge_conv):
        w, b = lin(next(keys), 2 * hidden + edge_dim, hidden)
        gamma, beta, mean, var = bn(next(keys), hidden)
        params["edge_convs"].append(dict(w=w, b=b, gamma=gamma, beta=beta,
                                         mean=mean, var=var))
    params["out_w"], params["out_b"] = lin(next(keys), hidden, output_dim)
    return params


def bn_fold(gamma, beta, mean, var, eps=1e-5):
    # eval-mode BatchNorm1d folded to affine: y = x*scale + shift
    scale = gamma / jnp.sqrt(var + eps)
    shift = beta - mean * scale
    return scale, shift


def _pad_linear(w, b):
    din, dout = w.shape
    wp = jnp.zeros((H_PAD, H_PAD), jnp.float32).at[:din, :dout].set(w)
    bp = jnp.zeros((1, H_PAD), jnp.float32).at[0, :dout].set(b)
    return wp.astype(jnp.bfloat16), bp


def _fuse_message_weights(w, b, hidden, edge_dim):
    # w: (2*hidden + edge_dim, hidden) for cat([x_i, x_j - x_i, e]).
    # Fused K=256 layout: rows [0:hidden] act on x_i, rows [hidden:hidden+edge_dim]
    # act on e (embedded in x_i's padded lanes), rows [H_PAD:H_PAD+hidden] on x_j - x_i.
    wc = jnp.zeros((2 * H_PAD, H_PAD), jnp.float32)
    wc = wc.at[:hidden, :hidden].set(w[:hidden])
    wc = wc.at[hidden:hidden + edge_dim, :hidden].set(w[2 * hidden:])
    wc = wc.at[H_PAD:H_PAD + hidden, :hidden].set(w[hidden:2 * hidden])
    bp = jnp.zeros((1, H_PAD), jnp.float32).at[0, :hidden].set(b)
    return wc.astype(jnp.bfloat16), bp


def fold_params(params, hidden, edge_dim):
    folded = {"emul_blocks": [], "edge_convs": []}
    for blk in params["emul_blocks"]:
        scale, shift = bn_fold(blk["gamma"], blk["beta"], blk["mean"], blk["var"])
        w_f = blk["mlp_w"] * scale[None, :]
        b_f = blk["mlp_b"] * scale + shift
        w_pad, b_pad = _pad_linear(w_f, b_f)
        wc, cb = _fuse_message_weights(blk["conv_w"], blk["conv_b"], hidden, edge_dim)
        folded["emul_blocks"].append(dict(w=w_pad, b=b_pad, wc=wc, cb=cb))
    for ec in params["edge_convs"]:
        scale, shift = bn_fold(ec["gamma"], ec["beta"], ec["mean"], ec["var"])
        w_f = ec["w"] * scale[None, :]
        b_f = ec["b"] * scale + shift
        wc, bp = _fuse_message_weights(w_f, b_f, hidden, edge_dim)
        folded["edge_convs"].append(dict(w=wc, b=bp))
    folded["out_w"], folded["out_b"] = _pad_linear(params["out_w"], params["out_b"])
    return folded


# ---------------------------------------------------------------------------
# Forward pass
# ---------------------------------------------------------------------------

def graphnn_knn_v2_forward(folded, x_in, edge_feat, *, graph, structs, n_nodes,
                           n_pad, tn, row_tile, hidden, edge_dim, output_dim):
    # pad node rows + lanes once for the whole stack; bf16 activations throughout
    x = jnp.zeros((n_pad, H_PAD), jnp.float32)
    x = x.at[:n_nodes, :x_in.shape[1]].set(x_in).astype(jnp.bfloat16)

    def embed_ef(ef):   # edge features live in the (always-zero) lanes [hidden:hidden+edge_dim]
        z = jnp.zeros((ef.shape[0], H_PAD), jnp.float32)
        return z.at[:, hidden:hidden + edge_dim].set(ef).astype(jnp.bfloat16)

    ef_edge = embed_ef(jnp.take(edge_feat, graph["edge_id"], axis=0))
    ef_orders = [embed_ef(jnp.take(edge_feat, st["edge_id"], axis=0)) for st in structs]

    # interleaved [Linear+BN+Tanh, EmulsionConv] blocks
    for blk in folded["emul_blocks"]:
        x = fused_linear(x, blk["w"], blk["b"], activation="tanh", row_tile=row_tile)
        for st, ef_o in zip(structs, ef_orders):        # orders applied sequentially
            x = emulsion_order_step(x, st, ef_o, blk["wc"], blk["cb"], tn=tn)
    # EdgeConvWithEdgeAttribute stack (max aggregation)
    for ec in folded["edge_convs"]:
        x = edge_conv_layer(x, graph, ef_edge, ec["w"], ec["b"], tn=tn)
    # output Linear
    x = fused_linear(x, folded["out_w"], folded["out_b"], activation="none",
                     row_tile=row_tile)
    return x[:n_nodes, :output_dim].astype(jnp.float32)


# ---------------------------------------------------------------------------

if __name__ == "__main__":
    N, E = 32, 64
    input_dim, hidden_dim, edge_dim, output_dim = 8, 32, 2, 10
    assert input_dim <= H_PAD and hidden_dim + edge_dim <= H_PAD and output_dim <= H_PAD

    key = jax.random.PRNGKey(0)
    k_x, k_ef, k_e, k_p = jax.random.split(key, 4)

    x = jax.random.normal(k_x, (N, input_dim), jnp.float32)
    edge_feat = jax.random.normal(k_ef, (E, edge_dim), jnp.float32)

    # edge_index (2, E): a ring (every node has >=1 incoming edge) + random extras
    ring_src = np.arange(N)
    ring_dst = (np.arange(N) + 1) % N
    extra = np.asarray(jax.random.randint(k_e, (2, E - N), 0, N))
    edge_index = np.stack([np.concatenate([ring_src, extra[0]]),
                           np.concatenate([ring_dst, extra[1]])]).astype(np.int64)

    # orders: boolean masks over edges, partitioned into two groups
    orders = [np.zeros(E, bool), np.zeros(E, bool)]
    orders[0][:E // 2] = True
    orders[1][E // 2:] = True

    # node tiling: large tiles (up to 256 nodes per grid step), bf16-friendly (x16)
    TN = min(256, _round_up(N, 16))
    n_pad = _round_up(N, TN)
    row_tile = n_pad if n_pad <= 1024 else (512 if n_pad % 512 == 0 else TN)

    graph = build_edge_conv_tables(edge_index, n_pad)
    structs = build_order_tables(edge_index, orders, n_pad)

    params = init_params(k_p, input_dim, hidden_dim, edge_dim, output_dim,
                         num_layers_emulsion=3, num_layers_edge_conv=3)
    folded = fold_params(params, hidden_dim, edge_dim)

    fwd = jax.jit(functools.partial(
        graphnn_knn_v2_forward, graph=graph, structs=structs, n_nodes=N,
        n_pad=n_pad, tn=TN, row_tile=row_tile, hidden=hidden_dim,
        edge_dim=edge_dim, output_dim=output_dim))

    out = jax.block_until_ready(fwd(folded, x, edge_feat))

    assert out.shape == (N, output_dim), out.shape
    assert bool(jnp.all(jnp.isfinite(out)))
    print("KERNEL_OK")
</pallas_src>

<mosaic_0001>
module attributes {stable_mosaic.version = 11 : i64} {
  func.func @_linear_act_kernel(%arg0: i32, %arg1: memref<32x128xbf16, #tpu.memory_space<vmem>>, %arg2: memref<128x128xbf16, #tpu.memory_space<vmem>>, %arg3: memref<1x128xf32, #tpu.memory_space<vmem>>, %arg4: memref<32x128xbf16, #tpu.memory_space<vmem>>) attributes {dimension_semantics = [#tpu.dimension_semantics<parallel>], iteration_bounds = array<i64: 1>, scalar_prefetch = 0 : i64, scratch_operands = 0 : i64, tpu.core_type = #tpu.core_type<tc>, window_params = [{transform_indices = @transform_0, window_bounds = array<i64: 32, 128>}, {pipeline_mode = #tpu.pipeline_mode<synchronous>, transform_indices = @transform_1, window_bounds = array<i64: 128, 128>}, {pipeline_mode = #tpu.pipeline_mode<synchronous>, transform_indices = @transform_2, window_bounds = array<i64: 1, 128>}, {transform_indices = @transform_3, window_bounds = array<i64: 32, 128>}]} {
    %c0 = arith.constant 0 : index
    %c0_0 = arith.constant 0 : index
    %0 = vector.load %arg1[%c0, %c0_0] : memref<32x128xbf16, #tpu.memory_space<vmem>>, vector<32x128xbf16>
    %c0_1 = arith.constant 0 : index
    %c0_2 = arith.constant 0 : index
    %1 = vector.load %arg2[%c0_1, %c0_2] : memref<128x128xbf16, #tpu.memory_space<vmem>>, vector<128x128xbf16>
    %cst = arith.constant dense<0.000000e+00> : vector<32x128xf32>
    %2 = tpu.matmul %0, %1, %cst {dimension_numbers = #tpu.dot_dimension_numbers<[1], [0], [0], [1], [0, 0, 1, 1], [], []>} : vector<32x128xbf16>, vector<128x128xbf16>, vector<32x128xf32> -> vector<32x128xf32>
    %c0_3 = arith.constant 0 : index
    %c0_4 = arith.constant 0 : index
    %3 = vector.load %arg3[%c0_3, %c0_4] : memref<1x128xf32, #tpu.memory_space<vmem>>, vector<1x128xf32>
    %4 = vector.broadcast %3 : vector<1x128xf32> to vector<32x128xf32>
    %5 = arith.addf %2, %4 : vector<32x128xf32>
    %6 = math.tanh %5 : vector<32x128xf32>
    %7 = arith.truncf %6 : vector<32x128xf32> to vector<32x128xbf16>
    %c0_5 = arith.constant 0 : index
    %c0_6 = arith.constant 0 : index
    %8 = vector.load %arg4[%c0_5, %c0_6] : memref<32x128xbf16, #tpu.memory_space<vmem>>, vector<32x128xbf16>
    tpu.vector_store %arg4[%c0_5, %c0_6], %7 {strides = array<i32>} : memref<32x128xbf16, #tpu.memory_space<vmem>>, vector<32x128xbf16>,
    return
  }
  func.func @transform_0(%arg0: i32) -> (i32, i32) {
    %c0_i32 = arith.constant 0 : i32
    %c0_i32_0 = arith.constant 0 : i32
    return %arg0, %c0_i32 : i32, i32
  }
  func.func @transform_1(%arg0: i32) -> (i32, i32) {
    %c0_i32 = arith.constant 0 : i32
    %c0_i32_0 = arith.constant 0 : i32
    %c0_i32_1 = arith.constant 0 : i32
    return %c0_i32, %c0_i32_0 : i32, i32
  }
  func.func @transform_2(%arg0: i32) -> (i32, i32) {
    %c0_i32 = arith.constant 0 : i32
    %c0_i32_0 = arith.constant 0 : i32
    %c0_i32_1 = arith.constant 0 : i32
    return %c0_i32, %c0_i32_0 : i32, i32
  }
  func.func @transform_3(%arg0: i32) -> (i32, i32) {
    %c0_i32 = arith.constant 0 : i32
    %c0_i32_0 = arith.constant 0 : i32
    return %arg0, %c0_i32 : i32, i32
  }
}

module attributes {stable_mosaic.version = 11 : i64} {
  func.func @_emulsion_kernel(%arg0: i32, %arg1: memref<32x128xbf16, #tpu.memory_space<vmem>>, %arg2: memref<256x256xbf16, #tpu.memory_space<vmem>>, %arg3: memref<256x1xf32, #tpu.memory_space<vmem>>, %arg4: memref<32x1xf32, #tpu.memory_space<vmem>>, %arg5: memref<256x128xbf16, #tpu.memory_space<vmem>>, %arg6: memref<1x128xf32, #tpu.memory_space<vmem>>, %arg7: memref<32x128xbf16, #tpu.memory_space<vmem>>) attributes {dimension_semantics = [#tpu.dimension_semantics<parallel>], iteration_bounds = array<i64: 1>, scalar_prefetch = 0 : i64, scratch_operands = 0 : i64, tpu.core_type = #tpu.core_type<tc>, window_params = [{transform_indices = @transform_0, window_bounds = array<i64: 32, 128>}, {transform_indices = @transform_1, window_bounds = array<i64: 256, 256>}, {transform_indices = @transform_2, window_bounds = array<i64: 256, 1>}, {transform_indices = @transform_3, window_bounds = array<i64: 32, 1>}, {pipeline_mode = #tpu.pipeline_mode<synchronous>, transform_indices = @transform_4, window_bounds = array<i64: 256, 128>}, {pipeline_mode = #tpu.pipeline_mode<synchronous>, transform_indices = @transform_5, window_bounds = array<i64: 1, 128>}, {transform_indices = @transform_6, window_bounds = array<i64: 32, 128>}]} {
    %c0 = arith.constant 0 : index
    %c0_0 = arith.constant 0 : index
    %0 = vector.load %arg2[%c0, %c0_0] : memref<256x256xbf16, #tpu.memory_space<vmem>>, vector<256x256xbf16>
    %c0_1 = arith.constant 0 : index
    %c0_2 = arith.constant 0 : index
    %1 = vector.load %arg5[%c0_1, %c0_2] : memref<256x128xbf16, #tpu.memory_space<vmem>>, vector<256x128xbf16>
    %cst = arith.constant dense<0.000000e+00> : vector<256x128xf32>
    %2 = tpu.matmul %0, %1, %cst {dimension_numbers = #tpu.dot_dimension_numbers<[1], [0], [0], [1], [0, 0, 1, 1], [], []>} : vector<256x256xbf16>, vector<256x128xbf16>, vector<256x128xf32> -> vector<256x128xf32>
    %c0_3 = arith.constant 0 : index
    %c0_4 = arith.constant 0 : index
    %3 = vector.load %arg6[%c0_3, %c0_4] : memref<1x128xf32, #tpu.memory_space<vmem>>, vector<1x128xf32>
    %4 = vector.broadcast %3 : vector<1x128xf32> to vector<256x128xf32>
    %5 = arith.addf %2, %4 : vector<256x128xf32>
    %cst_5 = arith.constant 0.000000e+00 : f32
    %6 = vector.broadcast %cst_5 : f32 to vector<256x128xf32>
    %7 = arith.maximumf %5, %6 : vector<256x128xf32>
    %c0_6 = arith.constant 0 : index
    %c0_7 = arith.constant 0 : index
    %8 = vector.load %arg3[%c0_6, %c0_7] : memref<256x1xf32, #tpu.memory_space<vmem>>, vector<256x1xf32>
    %9 = vector.broadcast %8 : vector<256x1xf32> to vector<256x128xf32>
    %10 = arith.mulf %7, %9 : vector<256x128xf32>
    %11 = vector.shape_cast %10 : vector<256x128xf32> to vector<32x8x128xf32>
    %cst_8 = arith.constant dense<0.000000e+00> : vector<32x128xf32>
    %12 = vector.multi_reduction <add>, %11, %cst_8 [1] : vector<32x8x128xf32> to vector<32x128xf32>
    %c0_9 = arith.constant 0 : index
    %c0_10 = arith.constant 0 : index
    %13 = vector.load %arg1[%c0_9, %c0_10] : memref<32x128xbf16, #tpu.memory_space<vmem>>, vector<32x128xbf16>
    %14 = arith.extf %13 : vector<32x128xbf16> to vector<32x128xf32>
    %c0_11 = arith.constant 0 : index
    %c0_12 = arith.constant 0 : index
    %15 = vector.load %arg4[%c0_11, %c0_12] : memref<32x1xf32, #tpu.memory_space<vmem>>, vector<32x1xf32>
    %cst_13 = arith.constant 0.000000e+00 : f32
    %16 = vector.broadcast %cst_13 : f32 to vector<32x1xf32>
    %17 = arith.cmpf ogt, %15, %16 : vector<32x1xf32>
    %18 = arith.addf %14, %12 : vector<32x128xf32>
    %cst_14 = arith.constant 5.000000e-01 : f32
    %19 = vector.broadcast %cst_14 : f32 to vector<32x128xf32>
    %20 = arith.mulf %18, %19 : vector<32x128xf32>
    %21 = vector.shape_cast %17 : vector<32x1xi1> to vector<32x1xi1>
    %22 = vector.broadcast %21 : vector<32x1xi1> to vector<32x128xi1>
    %23 = arith.select %22, %20, %14 : vector<32x128xi1>, vector<32x128xf32>
    %24 = arith.truncf %23 : vector<32x128xf32> to vector<32x128xbf16>
    %c0_15 = arith.constant 0 : index
    %c0_16 = arith.constant 0 : index
    %25 = vector.load %arg7[%c0_15, %c0_16] : memref<32x128xbf16, #tpu.memory_space<vmem>>, vector<32x128xbf16>
    tpu.vector_store %arg7[%c0_15, %c0_16], %24 {strides = array<i32>} : memref<32x128xbf16, #tpu.memory_space<vmem>>, vector<32x128xbf16>,
    return
  }
  func.func @transform_0(%arg0: i32) -> (i32, i32) {
    %c0_i32 = arith.constant 0 : i32
    %c0_i32_0 = arith.constant 0 : i32
    return %arg0, %c0_i32 : i32, i32
  }
  func.func @transform_1(%arg0: i32) -> (i32, i32) {
    %c0_i32 = arith.constant 0 : i32
    %c0_i32_0 = arith.constant 0 : i32
    return %arg0, %c0_i32 : i32, i32
  }
  func.func @transform_2(%arg0: i32) -> (i32, i32) {
    %c0_i32 = arith.constant 0 : i32
    %c0_i32_0 = arith.constant 0 : i32
    return %arg0, %c0_i32 : i32, i32
  }
  func.func @transform_3(%arg0: i32) -> (i32, i32) {
    %c0_i32 = arith.constant 0 : i32
    %c0_i32_0 = arith.constant 0 : i32
    return %arg0, %c0_i32 : i32, i32
  }
  func.func @transform_4(%arg0: i32) -> (i32, i32) {
    %c0_i32 = arith.constant 0 : i32
    %c0_i32_0 = arith.constant 0 : i32
    %c0_i32_1 = arith.constant 0 : i32
    return %c0_i32, %c0_i32_0 : i32, i32
  }
  func.func @transform_5(%arg0: i32) -> (i32, i32) {
    %c0_i32 = arith.constant 0 : i32
    %c0_i32_0 = arith.constant 0 : i32
    %c0_i32_1 = arith.constant 0 : i32
    return %c0_i32, %c0_i32_0 : i32, i32
  }
  func.func @transform_6(%arg0: i32) -> (i32, i32) {
    %c0_i32 = arith.constant 0 : i32
    %c0_i32_0 = arith.constant 0 : i32
    return %arg0, %c0_i32 : i32, i32
  }
}

module attributes {stable_mosaic.version = 11 : i64} {
  func.func @_edge_conv_kernel(%arg0: i32, %arg1: memref<256x256xbf16, #tpu.memory_space<vmem>>, %arg2: memref<256x1xf32, #tpu.memory_space<vmem>>, %arg3: memref<32x1xf32, #tpu.memory_space<vmem>>, %arg4: memref<256x128xbf16, #tpu.memory_space<vmem>>, %arg5: memref<1x128xf32, #tpu.memory_space<vmem>>, %arg6: memref<32x128xbf16, #tpu.memory_space<vmem>>) attributes {dimension_semantics = [#tpu.dimension_semantics<parallel>], iteration_bounds = array<i64: 1>, scalar_prefetch = 0 : i64, scratch_operands = 0 : i64, tpu.core_type = #tpu.core_type<tc>, window_params = [{transform_indices = @transform_0, window_bounds = array<i64: 256, 256>}, {transform_indices = @transform_1, window_bounds = array<i64: 256, 1>}, {transform_indices = @transform_2, window_bounds = array<i64: 32, 1>}, {pipeline_mode = #tpu.pipeline_mode<synchronous>, transform_indices = @transform_3, window_bounds = array<i64: 256, 128>}, {pipeline_mode = #tpu.pipeline_mode<synchronous>, transform_indices = @transform_4, window_bounds = array<i64: 1, 128>}, {transform_indices = @transform_5, window_bounds = array<i64: 32, 128>}]} {
    %c0 = arith.constant 0 : index
    %c0_0 = arith.constant 0 : index
    %0 = vector.load %arg1[%c0, %c0_0] : memref<256x256xbf16, #tpu.memory_space<vmem>>, vector<256x256xbf16>
    %c0_1 = arith.constant 0 : index
    %c0_2 = arith.constant 0 : index
    %1 = vector.load %arg4[%c0_1, %c0_2] : memref<256x128xbf16, #tpu.memory_space<vmem>>, vector<256x128xbf16>
    %cst = arith.constant dense<0.000000e+00> : vector<256x128xf32>
    %2 = tpu.matmul %0, %1, %cst {dimension_numbers = #tpu.dot_dimension_numbers<[1], [0], [0], [1], [0, 0, 1, 1], [], []>} : vector<256x256xbf16>, vector<256x128xbf16>, vector<256x128xf32> -> vector<256x128xf32>
    %c0_3 = arith.constant 0 : index
    %c0_4 = arith.constant 0 : index
    %3 = vector.load %arg5[%c0_3, %c0_4] : memref<1x128xf32, #tpu.memory_space<vmem>>, vector<1x128xf32>
    %4 = vector.broadcast %3 : vector<1x128xf32> to vector<256x128xf32>
    %5 = arith.addf %2, %4 : vector<256x128xf32>
    %6 = math.tanh %5 : vector<256x128xf32>
    %c0_5 = arith.constant 0 : index
    %c0_6 = arith.constant 0 : index
    %7 = vector.load %arg2[%c0_5, %c0_6] : memref<256x1xf32, #tpu.memory_space<vmem>>, vector<256x1xf32>
    %cst_7 = arith.constant 0.000000e+00 : f32
    %8 = vector.broadcast %cst_7 : f32 to vector<256x1xf32>
    %9 = arith.cmpf ogt, %7, %8 : vector<256x1xf32>
    %cst_8 = arith.constant -3.40282347E+38 : f32
    %10 = vector.shape_cast %9 : vector<256x1xi1> to vector<256x1xi1>
    %11 = vector.broadcast %10 : vector<256x1xi1> to vector<256x128xi1>
    %12 = vector.broadcast %cst_8 : f32 to vector<256x128xf32>
    %13 = arith.select %11, %6, %12 : vector<256x128xi1>, vector<256x128xf32>
    %14 = vector.shape_cast %13 : vector<256x128xf32> to vector<32x8x128xf32>
    %cst_9 = arith.constant dense<0xFF800000> : vector<32x128xf32>
    %15 = vector.multi_reduction <maximumf>, %14, %cst_9 [1] : vector<32x8x128xf32> to vector<32x128xf32>
    %c0_10 = arith.constant 0 : index
    %c0_11 = arith.constant 0 : index
    %16 = vector.load %arg3[%c0_10, %c0_11] : memref<32x1xf32, #tpu.memory_space<vmem>>, vector<32x1xf32>
    %cst_12 = arith.constant 0.000000e+00 : f32
    %17 = vector.broadcast %cst_12 : f32 to vector<32x1xf32>
    %18 = arith.cmpf ogt, %16, %17 : vector<32x1xf32>
    %cst_13 = arith.constant 0.000000e+00 : f32
    %19 = vector.shape_cast %18 : vector<32x1xi1> to vector<32x1xi1>
    %20 = vector.broadcast %19 : vector<32x1xi1> to vector<32x128xi1>
    %21 = vector.broadcast %cst_13 : f32 to vector<32x128xf32>
    %22 = arith.select %20, %15, %21 : vector<32x128xi1>, vector<32x128xf32>
    %23 = arith.truncf %22 : vector<32x128xf32> to vector<32x128xbf16>
    %c0_14 = arith.constant 0 : index
    %c0_15 = arith.constant 0 : index
    %24 = vector.load %arg6[%c0_14, %c0_15] : memref<32x128xbf16, #tpu.memory_space<vmem>>, vector<32x128xbf16>
    tpu.vector_store %arg6[%c0_14, %c0_15], %23 {strides = array<i32>} : memref<32x128xbf16, #tpu.memory_space<vmem>>, vector<32x128xbf16>,
    return
  }
  func.func @transform_0(%arg0: i32) -> (i32, i32) {
    %c0_i32 = arith.constant 0 : i32
    %c0_i32_0 = arith.constant 0 : i32
    return %arg0, %c0_i32 : i32, i32
  }
  func.func @transform_1(%arg0: i32) -> (i32, i32) {
    %c0_i32 = arith.constant 0 : i32
    %c0_i32_0 = arith.constant 0 : i32
    return %arg0, %c0_i32 : i32, i32
  }
  func.func @transform_2(%arg0: i32) -> (i32, i32) {
    %c0_i32 = arith.constant 0 : i32
    %c0_i32_0 = arith.constant 0 : i32
    return %arg0, %c0_i32 : i32, i32
  }
  func.func @transform_3(%arg0: i32) -> (i32, i32) {
    %c0_i32 = arith.constant 0 : i32
    %c0_i32_0 = arith.constant 0 : i32
    %c0_i32_1 = arith.constant 0 : i32
    return %c0_i32, %c0_i32_0 : i32, i32
  }
  func.func @transform_4(%arg0: i32) -> (i32, i32) {
    %c0_i32 = arith.constant 0 : i32
    %c0_i32_0 = arith.constant 0 : i32
    %c0_i32_1 = arith.constant 0 : i32
    return %c0_i32, %c0_i32_0 : i32, i32
  }
  func.func @transform_5(%arg0: i32) -> (i32, i32) {
    %c0_i32 = arith.constant 0 : i32
    %c0_i32_0 = arith.constant 0 : i32
    return %arg0, %c0_i32 : i32, i32
  }
}

module attributes {stable_mosaic.version = 11 : i64} {
  func.func @_linear_act_kernel(%arg0: i32, %arg1: memref<32x128xbf16, #tpu.memory_space<vmem>>, %arg2: memref<128x128xbf16, #tpu.memory_space<vmem>>, %arg3: memref<1x128xf32, #tpu.memory_space<vmem>>, %arg4: memref<32x128xbf16, #tpu.memory_space<vmem>>) attributes {dimension_semantics = [#tpu.dimension_semantics<parallel>], iteration_bounds = array<i64: 1>, scalar_prefetch = 0 : i64, scratch_operands = 0 : i64, tpu.core_type = #tpu.core_type<tc>, window_params = [{transform_indices = @transform_0, window_bounds = array<i64: 32, 128>}, {pipeline_mode = #tpu.pipeline_mode<synchronous>, transform_indices = @transform_1, window_bounds = array<i64: 128, 128>}, {pipeline_mode = #tpu.pipeline_mode<synchronous>, transform_indices = @transform_2, window_bounds = array<i64: 1, 128>}, {transform_indices = @transform_3, window_bounds = array<i64: 32, 128>}]} {
    %c0 = arith.constant 0 : index
    %c0_0 = arith.constant 0 : index
    %0 = vector.load %arg1[%c0, %c0_0] : memref<32x128xbf16, #tpu.memory_space<vmem>>, vector<32x128xbf16>
    %c0_1 = arith.constant 0 : index
    %c0_2 = arith.constant 0 : index
    %1 = vector.load %arg2[%c0_1, %c0_2] : memref<128x128xbf16, #tpu.memory_space<vmem>>, vector<128x128xbf16>
    %cst = arith.constant dense<0.000000e+00> : vector<32x128xf32>
    %2 = tpu.matmul %0, %1, %cst {dimension_numbers = #tpu.dot_dimension_numbers<[1], [0], [0], [1], [0, 0, 1, 1], [], []>} : vector<32x128xbf16>, vector<128x128xbf16>, vector<32x128xf32> -> vector<32x128xf32>
    %c0_3 = arith.constant 0 : index
    %c0_4 = arith.constant 0 : index
    %3 = vector.load %arg3[%c0_3, %c0_4] : memref<1x128xf32, #tpu.memory_space<vmem>>, vector<1x128xf32>
    %4 = vector.broadcast %3 : vector<1x128xf32> to vector<32x128xf32>
    %5 = arith.addf %2, %4 : vector<32x128xf32>
    %6 = arith.truncf %5 : vector<32x128xf32> to vector<32x128xbf16>
    %c0_5 = arith.constant 0 : index
    %c0_6 = arith.constant 0 : index
    %7 = vector.load %arg4[%c0_5, %c0_6] : memref<32x128xbf16, #tpu.memory_space<vmem>>, vector<32x128xbf16>
    tpu.vector_store %arg4[%c0_5, %c0_6], %6 {strides = array<i32>} : memref<32x128xbf16, #tpu.memory_space<vmem>>, vector<32x128xbf16>,
    return
  }
  func.func @transform_0(%arg0: i32) -> (i32, i32) {
    %c0_i32 = arith.constant 0 : i32
    %c0_i32_0 = arith.constant 0 : i32
    return %arg0, %c0_i32 : i32, i32
  }
  func.func @transform_1(%arg0: i32) -> (i32, i32) {
    %c0_i32 = arith.constant 0 : i32
    %c0_i32_0 = arith.constant 0 : i32
    %c0_i32_1 = arith.constant 0 : i32
    return %c0_i32, %c0_i32_0 : i32, i32
  }
  func.func @transform_2(%arg0: i32) -> (i32, i32) {
    %c0_i32 = arith.constant 0 : i32
    %c0_i32_0 = arith.constant 0 : i32
    %c0_i32_1 = arith.constant 0 : i32
    return %c0_i32, %c0_i32_0 : i32, i32
  }
  func.func @transform_3(%arg0: i32) -> (i32, i32) {
    %c0_i32 = arith.constant 0 : i32
    %c0_i32_0 = arith.constant 0 : i32
    return %arg0, %c0_i32 : i32, i32
  }
}

</mosaic_0001>

<bundles_post_ra>
// kernel: graphnn_knn_v2_forward.13
= control target key start
LH: loop header
LB: loop body
LE: loop exit
PB: predicated region body
PF: predicated region fallthrough
CT: control target
= control target key end

     0   :  { %s316_s1 = inlined_call_operand.vmem [shape: bf16[128,128], index: 1, kind: input, shape index: {}]   ;;  %s317_s0 = inlined_call_operand.vmem [shape: bf16[32,128], index: 0, kind: input, shape index: {}]   ;;  %s318_s2 = inlined_call_operand.vmem [shape: f32[1,128], index: 2, kind: input, shape index: {}]   ;;  %s319_s3 = inlined_call_operand.vmem [shape: bf16[32,128], index: 3, kind: output, shape index: {}]  }
   0x1   :  { %v239_v0 = vld [vmem:[%s316_s1 + $0x38] sm:$0xff]   ;;  %v240_v1 = vld [vmem:[%s316_s1 + $0x30] sm:$0xff]   ;;  %v241_v2 = vld [vmem:[%s316_s1 + $0x28] sm:$0xff]  }
   0x2   :  { %219 = vmatprep.subr.bf16.mxu0 %v239_v0  ;;  %v242_v3 = vld [vmem:[%s316_s1 + $0x20] sm:$0xff]   ;;  %v243_v5 = vld [vmem:[%s316_s1 + $0x18] sm:$0xff]   ;;  %v244_v6 = vld [vmem:[%s316_s1 + $0x10] sm:$0xff]  }
   0x3   :  { %220 = vmatpush3.bf16.msra.mxu0 %v239_v0  ;;  %v247_v4 = vld [vmem:[%s317_s0] sm:$0xff]   ;;  %v245_v7 = vld [vmem:[%s316_s1 + $0x8] sm:$0xff]  }
   0x4   :  { %221 = vmatprep.subr.bf16.mxu0 %v240_v1  ;;  %235 = vmatprep.mubr.bf16.mxu0 %v247_v4  ;;  %v246_v8 = vld [vmem:[%s316_s1] sm:$0xff]   ;;  %v248_v9 = vld [vmem:[%s317_s0 + $0x8] sm:$0xff]  }
   0x5   :  { %v179_v10 = vld [vmem:[%s318_s2] ss:$0 sm:$0xff] }
   0x7   :  { %222 = vmatpush3.bf16.msra.mxu0 %v240_v1 }
   0x8   :  { %223 = vmatprep.subr.bf16.mxu0 %v241_v2 }
   0xb   :  { %224 = vmatpush3.bf16.msra.mxu0 %v241_v2 }
   0xc   :  { %225 = vmatprep.subr.bf16.mxu0 %v242_v3 }
   0xf   :  { %226 = vmatpush3.bf16.msra.mxu0 %v242_v3 }
  0x10   :  { %227 = vmatprep.subr.bf16.mxu0 %v243_v5 }
  0x13   :  { %228 = vmatpush3.bf16.msra.mxu0 %v243_v5 }
  0x14   :  { %229 = vmatprep.subr.bf16.mxu0 %v244_v6 }
  0x17   :  { %230 = vmatpush3.bf16.msra.mxu0 %v244_v6 }
  0x18   :  { %231 = vmatprep.subr.bf16.mxu0 %v245_v7 }
  0x1b   :  { %232 = vmatpush3.bf16.msra.mxu0 %v245_v7 }
  0x1c   :  { %233 = vmatprep.subr.bf16.mxu0 %v246_v8 }
  0x1f   :  { %234 = vmatpush3.bf16.msra.mxu0 %v246_v8 }
  0x22   :  { %236 = vmatmul.mubr.bf16.vlgmr.msra.gmra.mxu0 %v248_v9 }
  0xe2   :  { %v237_v11 = vpop.f32.mrf.mxu0 }
  0xe3   :  { %v145_v12 = vadd.f32 %v237_v11, %v179_v10 }
  0xe4   :  { %v136_v13 = vpop.f32.mrf.mxu0 }
  0xe5   :  { %v137_v14 = vadd.f32 %v179_v10, %v136_v13  ;;  %249 = vtanh.f32 %v145_v12 }
  0xe6   :  { %v238_v15 = vpop.f32.mrf.mxu0 }
  0xe7   :  { %v148_v16 = vadd.f32 %v238_v15, %v179_v10 }
  0xe8   :  { %v139_v17 = vpop.f32.mrf.mxu0 }
  0xe9   :  { %251 = vtanh.f32 %v148_v16  ;;  %v140_v18 = vadd.f32 %v179_v10, %v139_v17 }
  0xea   :  { %253 = vtanh.f32 %v137_v14 }
  0xeb   :  { %255 = vtanh.f32 %v140_v18 }
  0xf2   :  { %v250_v19 = vpop.eup %249 }
  0xf6   :  { %v252_v20 = vpop.eup %251 }
  0xf7   :  { %v254_v21 = vpop.eup %253  ;;  %v206_v22 = vpack.c.bf16 %v252_v20, %v250_v19 }
  0xf8   :  { %v256_v23 = vpop.eup %255 }
  0xf9   :  { %208 = vst [vmem:[%s319_s3 + $0x8] sm:$0xff] %v206_v22   ;;  %v201_v24 = vpack.c.bf16 %v256_v23, %v254_v21 }
  0xfb   :  { %202 = vst [vmem:[%s319_s3] sm:$0xff] %v201_v24  }

// kernel: graphnn_knn_v2_forward.14
= control target key start
LH: loop header
LB: loop body
LE: loop exit
PB: predicated region body
PF: predicated region fallthrough
CT: control target
= control target key end

     0   :  { %v1375_v1 = vmov 0   ;;  %vm1008_vm4 = vcmask 1041409   ;;  %vm1010_vm5 = vcmask 1042434   ;;  %vm1012_vm6 = vcmask 1043459   ;;  %s1884_s4 = inlined_call_operand.vmem [shape: bf16[256,128], index: 4, kind: input, shape index: {}]   ;;  %s1885_s1 = inlined_call_operand.vmem [shape: bf16[256,256], index: 1, kind: input, shape index: {}]   ;;  %s1886_s2 = inlined_call_operand.vmem [shape: f32[256,1], index: 2, kind: input, shape index: {}]   ;;  %s1887_s3 = inlined_call_operand.vmem [shape: f32[32,1], index: 3, kind: input, shape index: {}]   ;;  %s1888_s5 = inlined_call_operand.vmem [shape: f32[1,128], index: 5, kind: input, shape index: {}]   ;;  %s1889_s0 = inlined_call_operand.vmem [shape: bf16[32,128], index: 0, kind: input, shape index: {}, may-alias: {0,6}]   ;;  %s1890_s6 = inlined_call_operand.vmem [shape: bf16[32,128], index: 6, kind: output, shape index: {}, may-alias: {0,6}]  }
   0x1   :  { %v1311_v0 = vld [vmem:[%s1884_s4 + $0x78] sm:$0xff]   ;;  %1310 = vset.pattern.permute.xlu1 %v1375_v1  ;;  %1309 = vset.pattern.permute.xlu0 %v1375_v1  ;;  %v1313_v3 = vld [vmem:[%s1884_s4 + $0x70] sm:$0xff]   ;;  %v1315_v5 = vld [vmem:[%s1884_s4 + $0x68] sm:$0xff]   ;;  %vm1014_vm7 = vcmask 1044484   ;;  %vm1016_vm8 = vcmask 1045509   ;;  %vm1018_vm9 = vcmask 1046534  }
   0x2   :  { %v1312_v2 = vld [vmem:[%s1884_s4 + $0x38] sm:$0xff]   ;;  %1180 = vmatprep.subr.bf16.mxu0 %v1311_v0  ;;  %1292 = vmatprep.subr.bf16.mxu1 %v1311_v0  ;;  %v1314_v4 = vld [vmem:[%s1884_s4 + $0x30] sm:$0xff]   ;;  %v1316_v6 = vld [vmem:[%s1884_s4 + $0x28] sm:$0xff]   ;;  %vm1020_vm10 = vcmask 1047559  }
   0x3   :  { %1181 = vmatpush3.bf16.msra.mxu0 %v1312_v2  ;;  %1300 = vmatpush3.bf16.msra.mxu1 %v1312_v2  ;;  %v1317_v7 = vld [vmem:[%s1884_s4 + $0x60] sm:$0xff]   ;;  %v1319_v9 = vld [vmem:[%s1884_s4 + $0x58] sm:$0xff]   ;;  %v1321_v11 = vld [vmem:[%s1884_s4 + $0x50] sm:$0xff]  }
   0x4   :  { %1182 = vmatprep.subr.bf16.mxu0 %v1313_v3  ;;  %1293 = vmatprep.subr.bf16.mxu1 %v1313_v3  ;;  %v1318_v8 = vld [vmem:[%s1884_s4 + $0x20] sm:$0xff]   ;;  %v1320_v10 = vld [vmem:[%s1884_s4 + $0x18] sm:$0xff]   ;;  %v1322_v14 = vld [vmem:[%s1884_s4 + $0x10] sm:$0xff]  }
   0x5   :  { %v1329_v12 = vld [vmem:[%s1885_s1 + $0x4] ss:$8 sps:$4 sm:$0xff]   ;;  %v546_v16 = vld [vmem:[%s1886_s2 + $0x10] sm:$0xff]  ;;  %v547_v19 = vld [vmem:[%s1886_s2 + $0x18] sm:$0xff] }
   0x6   :  { %v1332_v13 = vld [vmem:[%s1885_s1 + $0x84] ss:$8 sps:$4 sm:$0xff]   ;;  %383 = vmatprep.mubr.bf16.mxu0 %v1329_v12  ;;  %588 = vperm.xlu1 %1310, %v546_v16   ;;  %v1327_v25 = vld [vmem:[%s1885_s1] ss:$8 sps:$4 sm:$0xff]   ;;  %v1333_v27 = vld [vmem:[%s1885_s1 + $0x14] ss:$8 sps:$4 sm:$0xff]  }
   0x7   :  { %1183 = vmatpush3.bf16.msra.mxu0 %v1314_v4  ;;  %1301 = vmatpush3.bf16.msra.mxu1 %v1314_v4  ;;  %v1323_v15 = vld [vmem:[%s1884_s4 + $0x48] sm:$0xff]   ;;  %v544_v17 = vld [vmem:[%s1886_s2] sm:$0xff]  ;;  %v1335_v28 = vld [vmem:[%s1885_s1 + $0x94] ss:$8 sps:$4 sm:$0xff]  }
   0x8   :  { %1184 = vmatprep.subr.bf16.mxu0 %v1315_v5  ;;  %1294 = vmatprep.subr.bf16.mxu1 %v1315_v5  ;;  %v1324_v18 = vld [vmem:[%s1884_s4 + $0x8] sm:$0xff]   ;;  %v1325_v21 = vld [vmem:[%s1884_s4 + $0x40] sm:$0xff]   ;;  %v551_v29 = vld [vmem:[%s1886_s2 + $0x38] sm:$0xff] }
   0x9   :  { %447 = vmatprep.mubr.bf16.mxu1 %v1332_v13  ;;  %578 = vperm.xlu0 %1309, %v544_v17   ;;  %v545_v20 = vld [vmem:[%s1886_s2 + $0x8] sm:$0xff]  ;;  %v1326_v22 = vld [vmem:[%s1884_s4] sm:$0xff]   ;;  %v550_v30 = vld [vmem:[%s1886_s2 + $0x30] sm:$0xff] }
   0xa   :  { %593 = vperm.xlu1 %1310, %v547_v19   ;;  %v549_v23 = vld [vmem:[%s1886_s2 + $0x28] sm:$0xff]  ;;  %v548_v24 = vld [vmem:[%s1886_s2 + $0x20] sm:$0xff]  ;;  %v1337_v31 = vld [vmem:[%s1885_s1 + $0x10] ss:$8 sps:$4 sm:$0xff]  }
   0xb   :  { %1185 = vmatpush3.bf16.msra.mxu0 %v1316_v6  ;;  %1302 = vmatpush3.bf16.msra.mxu1 %v1316_v6  ;;  %v1330_v26 = vld [vmem:[%s1885_s1 + $0x80] ss:$8 sps:$4 sm:$0xff]   ;;  %v1338_v34 = vld [vmem:[%s1885_s1 + $0x90] ss:$8 sps:$4 sm:$0xff]   ;;  %v1339_v35 = vld [vmem:[%s1885_s1 + $0x24] ss:$8 sps:$4 sm:$0xff]  }
   0xc   :  { %1186 = vmatprep.subr.bf16.mxu0 %v1317_v7  ;;  %1295 = vmatprep.subr.bf16.mxu1 %v1317_v7  ;;  %v553_v32 = vld [vmem:[%s1886_s2 + $0x48] sm:$0xff]  ;;  %v552_v33 = vld [vmem:[%s1886_s2 + $0x40] sm:$0xff]  ;;  %v555_v37 = vld [vmem:[%s1886_s2 + $0x58] sm:$0xff] }
   0xd   :  { %583 = vperm.xlu0 %1309, %v545_v20   ;;  %v1341_v36 = vld [vmem:[%s1885_s1 + $0xa4] ss:$8 sps:$4 sm:$0xff]   ;;  %v554_v38 = vld [vmem:[%s1886_s2 + $0x50] sm:$0xff]  ;;  %v1343_v41 = vld [vmem:[%s1885_s1 + $0x20] ss:$8 sps:$4 sm:$0xff]  }
   0xe   :  { %603 = vperm.xlu1 %1310, %v549_v23   ;;  %v557_v39 = vld [vmem:[%s1886_s2 + $0x68] sm:$0xff]  ;;  %v556_v40 = vld [vmem:[%s1886_s2 + $0x60] sm:$0xff]  ;;  %v1345_v43 = vld [vmem:[%s1885_s1 + $0x34] ss:$8 sps:$4 sm:$0xff]  }
   0xf   :  { %1187 = vmatpush3.bf16.msra.mxu0 %v1318_v8  ;;  %1303 = vmatpush3.bf16.msra.mxu1 %v1318_v8  ;;  %v1344_v42 = vld [vmem:[%s1885_s1 + $0xa0] ss:$8 sps:$4 sm:$0xff]   ;;  %v1347_v44 = vld [vmem:[%s1885_s1 + $0xb4] ss:$8 sps:$4 sm:$0xff]   ;;  %v1349_v49 = vld [vmem:[%s1885_s1 + $0x30] ss:$8 sps:$4 sm:$0xff]  }
  0x10   :  { %1188 = vmatprep.subr.bf16.mxu0 %v1319_v9  ;;  %1296 = vmatprep.subr.bf16.mxu1 %v1319_v9  ;;  %v561_v45 = vld [vmem:[%s1886_s2 + $0x88] sm:$0xff]  ;;  %v560_v46 = vld [vmem:[%s1886_s2 + $0x80] sm:$0xff]  ;;  %v1350_v50 = vld [vmem:[%s1885_s1 + $0xb0] ss:$8 sps:$4 sm:$0xff]  }
  0x11   :  { %598 = vperm.xlu0 %1309, %v548_v24   ;;  %v569_v47 = vld [vmem:[%s1886_s2 + $0xc8] sm:$0xff]  ;;  %v568_v48 = vld [vmem:[%s1886_s2 + $0xc0] sm:$0xff]  ;;  %v570_v53 = vld [vmem:[%s1886_s2 + $0xd0] sm:$0xff] }
  0x12   :  { %613 = vperm.xlu1 %1310, %v551_v29   ;;  %v1351_v51 = vld [vmem:[%s1885_s1 + $0x44] ss:$8 sps:$4 sm:$0xff]   ;;  %v562_v54 = vld [vmem:[%s1886_s2 + $0x90] sm:$0xff]  ;;  %v571_v55 = vld [vmem:[%s1886_s2 + $0xd8] sm:$0xff] }
  0x13   :  { %1189 = vmatpush3.bf16.msra.mxu0 %v1320_v10  ;;  %1304 = vmatpush3.bf16.msra.mxu1 %v1320_v10  ;;  %v1353_v52 = vld [vmem:[%s1885_s1 + $0xc4] ss:$8 sps:$4 sm:$0xff]   ;;  %v563_v56 = vld [vmem:[%s1886_s2 + $0x98] sm:$0xff]  ;;  %v1355_v57 = vld [vmem:[%s1885_s1 + $0x40] ss:$8 sps:$4 sm:$0xff]  }
  0x14   :  { %1190 = vmatprep.subr.bf16.mxu0 %v1321_v11  ;;  %1297 = vmatprep.subr.bf16.mxu1 %v1321_v11  ;;  %v1356_v58 = vld [vmem:[%s1885_s1 + $0xc0] ss:$8 sps:$4 sm:$0xff]   ;;  %v1357_v59 = vld [vmem:[%s1885_s1 + $0x54] ss:$8 sps:$4 sm:$0xff]   ;;  %v1361_v2 = vld [vmem:[%s1885_s1 + $0x50] ss:$8 sps:$4 sm:$0xff]  }
  0x15   :  { %608 = vperm.xlu0 %1309, %v550_v30   ;;  %v1359_v60 = vld [vmem:[%s1885_s1 + $0xd4] ss:$8 sps:$4 sm:$0xff]   ;;  %v572_v61 = vld [vmem:[%s1886_s2 + $0xe0] sm:$0xff]  ;;  %v573_v63 = vld [vmem:[%s1886_s2 + $0xe8] sm:$0xff] }
  0x16   :  { %623 = vperm.xlu1 %1310, %v553_v32   ;;  %v564_v62 = vld [vmem:[%s1886_s2 + $0xa0] sm:$0xff]  ;;  %v565_v0 = vld [vmem:[%s1886_s2 + $0xa8] sm:$0xff]  ;;  %v1362_v3 = vld [vmem:[%s1885_s1 + $0xd0] ss:$8 sps:$4 sm:$0xff]  }
  0x17   :  { %1191 = vmatpush3.bf16.msra.mxu0 %v1322_v14  ;;  %1305 = vmatpush3.bf16.msra.mxu1 %v1322_v14  ;;  %v1363_v4 = vld [vmem:[%s1885_s1 + $0x64] ss:$8 sps:$4 sm:$0xff]   ;;  %v566_v6 = vld [vmem:[%s1886_s2 + $0xb0] sm:$0xff]  ;;  %v559_v8 = vld [vmem:[%s1886_s2 + $0x78] sm:$0xff] }
  0x18   :  { %1192 = vmatprep.subr.bf16.mxu0 %v1323_v15  ;;  %1298 = vmatprep.subr.bf16.mxu1 %v1323_v15  ;;  %v1365_v5 = vld [vmem:[%s1885_s1 + $0xe4] ss:$8 sps:$4 sm:$0xff]   ;;  %v558_v7 = vld [vmem:[%s1886_s2 + $0x70] sm:$0xff]  ;;  %v1367_v10 = vld [vmem:[%s1885_s1 + $0x60] ss:$8 sps:$4 sm:$0xff]  }
  0x19   :  { %618 = vperm.xlu0 %1309, %v552_v33   ;;  %v574_v9 = vld [vmem:[%s1886_s2 + $0xf0] sm:$0xff]  ;;  %v1368_v11 = vld [vmem:[%s1885_s1 + $0xe0] ss:$8 sps:$4 sm:$0xff]   ;;  %v575_v16 = vld [vmem:[%s1886_s2 + $0xf8] sm:$0xff] }
  0x1a   :  { %633 = vperm.xlu1 %1310, %v555_v37   ;;  %v1369_v12 = vld [vmem:[%s1885_s1 + $0x74] ss:$8 sps:$4 sm:$0xff]   ;;  %v969_v14 = vld [vmem:[%s1887_s3 + $0x8] sm:$0xff]  ;;  %v968_v15 = vld [vmem:[%s1887_s3] sm:$0xff] }
  0x1b   :  { %1193 = vmatpush3.bf16.msra.mxu0 %v1324_v18  ;;  %1306 = vmatpush3.bf16.msra.mxu1 %v1324_v18  ;;  %v1371_v13 = vld [vmem:[%s1885_s1 + $0xf4] ss:$8 sps:$4 sm:$0xff]   ;;  %vm973_vm0 = vcmp.gt.f32.partialorder %v969_v14, 0.0  ;;  %vm972_vm1 = vcmp.gt.f32.partialorder %v968_v15, 0.0  ;;  %v1374_v23 = vld [vmem:[%s1885_s1 + $0xf0] ss:$8 sps:$4 sm:$0xff]  }
  0x1c   :  { %1194 = vmatprep.subr.bf16.mxu0 %v1325_v21  ;;  %1299 = vmatprep.subr.bf16.mxu1 %v1325_v21  ;;  %v567_v17 = vld [vmem:[%s1886_s2 + $0xb8] sm:$0xff]  ;;  %v970_v19 = vld [vmem:[%s1887_s3 + $0x10] sm:$0xff]  ;;  %v1056_v20 = vsel %vm973_vm0, 1, %v1375_v1  ;;  %v1055_v21 = vsel %vm972_vm1, 1, %v1375_v1 }
  0x1d   :  { %628 = vperm.xlu0 %1309, %v554_v38   ;;  %v971_v18 = vld [vmem:[%s1887_s3 + $0x18] sm:$0xff]  ;;  %vm974_vm3 = vcmp.gt.f32.partialorder %v970_v19, 0.0 }
  0x1e   :  { %643 = vperm.xlu1 %1310, %v557_v39   ;;  %vm975_vm2 = vcmp.gt.f32.partialorder %v971_v18, 0.0 }
  0x1f   :  { %1195 = vmatpush3.bf16.msra.mxu0 %v1326_v22  ;;  %1307 = vmatpush3.bf16.msra.mxu1 %v1326_v22  ;;  %v1373_v22 = vld [vmem:[%s1885_s1 + $0x70] ss:$8 sps:$4 sm:$0xff]   ;;  %v1058_v24 = vsel %vm975_vm2, 1, %v1375_v1 }
  0x21   :  { %638 = vperm.xlu0 %1309, %v556_v40  }
  0x22   :  { %384 = vmatmul.mubr.bf16.vlgmr.msra.gmra.mxu0 %v1327_v25  ;;  %448 = vmatmul.mubr.bf16.vlgmr.msra.gmra.mxu1 %v1330_v26  ;;  %v1057_v25 = vsel %vm974_vm3, 1, %v1375_v1 }
  0x23   :  { %391 = vmatprep.mubr.bf16.mxu0 %v1333_v27  ;;  %455 = vmatprep.mubr.bf16.mxu1 %v1335_v28 }
  0x24   :  { %663 = vperm.xlu1 %1310, %v561_v45  }
  0x25   :  { %658 = vperm.xlu0 %1309, %v560_v46   ;;  %v1698_v46 = vld [vmem:[%s1888_s5] ss:$0 sm:$0xff] }
  0x28   :  { %703 = vperm.xlu1 %1310, %v569_v47  }
  0x29   :  { %698 = vperm.xlu0 %1309, %v568_v48  }
  0x2a   :  { %392 = vmatmul.mubr.bf16.gmra.mxu0 %v1337_v31  ;;  %456 = vmatmul.mubr.bf16.gmra.mxu1 %v1338_v34 }
  0x2b   :  { %399 = vmatprep.mubr.bf16.mxu0 %v1339_v35  ;;  %463 = vmatprep.mubr.bf16.mxu1 %v1341_v36 }
  0x2c   :  { %708 = vperm.xlu1 %1310, %v570_v53  }
  0x2d   :  { %668 = vperm.xlu0 %1309, %v562_v54  }
  0x30   :  { %713 = vperm.xlu1 %1310, %v571_v55  }
  0x31   :  { %673 = vperm.xlu0 %1309, %v563_v56  }
  0x32   :  { %400 = vmatmul.mubr.bf16.gmra.mxu0 %v1343_v41  ;;  %464 = vmatmul.mubr.bf16.gmra.mxu1 %v1344_v42 }
  0x33   :  { %407 = vmatprep.mubr.bf16.mxu0 %v1345_v43  ;;  %471 = vmatprep.mubr.bf16.mxu1 %v1347_v44 }
  0x34   :  { %718 = vperm.xlu1 %1310, %v572_v61  }
  0x35   :  { %678 = vperm.xlu0 %1309, %v564_v62  }
  0x38   :  { %723 = vperm.xlu1 %1310, %v573_v63  }
  0x39   :  { %683 = vperm.xlu0 %1309, %v565_v0  }
  0x3a   :  { %408 = vmatmul.mubr.bf16.gmra.mxu0 %v1349_v49  ;;  %472 = vmatmul.mubr.bf16.gmra.mxu1 %v1350_v50 }
  0x3b   :  { %415 = vmatprep.mubr.bf16.mxu0 %v1351_v51  ;;  %479 = vmatprep.mubr.bf16.mxu1 %v1353_v52 }
  0x3c   :  { %688 = vperm.xlu1 %1310, %v566_v6  }
  0x3d   :  { %648 = vperm.xlu0 %1309, %v558_v7  }
  0x40   :  { %653 = vperm.xlu1 %1310, %v559_v8  }
  0x41   :  { %728 = vperm.xlu0 %1309, %v574_v9  }
  0x42   :  { %416 = vmatmul.mubr.bf16.gmra.mxu0 %v1355_v57  ;;  %480 = vmatmul.mubr.bf16.gmra.mxu1 %v1356_v58 }
  0x43   :  { %423 = vmatprep.mubr.bf16.mxu0 %v1357_v59  ;;  %487 = vmatprep.mubr.bf16.mxu1 %v1359_v60 }
  0x44   :  { %733 = vperm.xlu1 %1310, %v575_v16  }
  0x45   :  { %693 = vperm.xlu0 %1309, %v567_v17  }
  0x48   :  { %1063 = vperm.xlu1 %1310, %v1056_v20  }
  0x49   :  { %1060 = vperm.xlu0 %1309, %v1055_v21  }
  0x4a   :  { %424 = vmatmul.mubr.bf16.gmra.mxu0 %v1361_v2  ;;  %488 = vmatmul.mubr.bf16.gmra.mxu1 %v1362_v3 }
  0x4b   :  { %431 = vmatprep.mubr.bf16.mxu0 %v1363_v4  ;;  %495 = vmatprep.mubr.bf16.mxu1 %v1365_v5 }
  0x4c   :  { %1069 = vperm.xlu1 %1310, %v1058_v24  }
  0x4d   :  { %1066 = vperm.xlu0 %1309, %v1057_v25  }
  0x52   :  { %432 = vmatmul.mubr.bf16.gmra.mxu0 %v1367_v10  ;;  %496 = vmatmul.mubr.bf16.gmra.mxu1 %v1368_v11 }
  0x53   :  { %439 = vmatprep.mubr.bf16.mxu0 %v1369_v12  ;;  %503 = vmatprep.mubr.bf16.mxu1 %v1371_v13 }
  0x5a   :  { %440 = vmatmul.mubr.bf16.gmra.mxu0 %v1373_v22  ;;  %504 = vmatmul.mubr.bf16.gmra.mxu1 %v1374_v23 }
  0x81   :  { %v1669_v27 = vpop.permute.xlu1 %588 }
  0x84   :  { %v579_v26 = vpop.permute.xlu0 %578 }
  0x85   :  { %v1671_v29 = vpop.permute.xlu1 %593 }
  0x88   :  { %v584_v28 = vpop.permute.xlu0 %583 }
  0x89   :  { %v1675_v31 = vpop.permute.xlu1 %603 }
  0x8c   :  { %v1673_v30 = vpop.permute.xlu0 %598 }
  0x8d   :  { %v1679_v33 = vpop.permute.xlu1 %613 }
  0x90   :  { %v1677_v32 = vpop.permute.xlu0 %608 }
  0x91   :  { %v1683_v1 = vpop.permute.xlu1 %623 }
  0x94   :  { %v1681_v34 = vpop.permute.xlu0 %618 }
  0x95   :  { %v1687_v36 = vpop.permute.xlu1 %633 }
  0x98   :  { %v1685_v35 = vpop.permute.xlu0 %628 }
  0x99   :  { %v1691_v38 = vpop.permute.xlu1 %643 }
  0x9a   :  { %1891 = vst [vmem:[#allocation2_spill] sm:$0xff] %v1691_v38 }
  0x9c   :  { %v1689_v37 = vpop.permute.xlu0 %638 }
  0x9f   :  { %v664_v44 = vpop.permute.xlu1 %663 }
  0xa0   :  { %v659_v39 = vpop.permute.xlu0 %658 }
  0xa3   :  { %v1702_v59 = vpop.permute.xlu1 %703 }
  0xa4   :  { %v1693_v45 = vpop.permute.xlu0 %698 }
  0xa7   :  { %v1708_v16 = vpop.permute.xlu1 %708 }
  0xa8   :  { %v669_v60 = vpop.permute.xlu0 %668 }
  0xac   :  { %v674_v17 = vpop.permute.xlu0 %673 }
  0xe2   :  { %v1196_v40 = vpop.f32.mrf.mxu0  ;;  %v1244_v41 = vpop.f32.mrf.mxu1 }
  0xe4   :  { %v1197_v42 = vpop.f32.mrf.mxu0  ;;  %v1245_v43 = vpop.f32.mrf.mxu1 }
  0xe5   :  { %v1198_v47 = vadd.f32 %v1197_v42, %v1196_v40  ;;  %v1246_v48 = vadd.f32 %v1245_v43, %v1244_v41 }
  0xe6   :  { %v1199_v49 = vpop.f32.mrf.mxu0  ;;  %v1247_v50 = vpop.f32.mrf.mxu1 }
  0xe7   :  { %v386_v51 = vadd.f32 %v1198_v47, %v1698_v46  ;;  %v450_v52 = vadd.f32 %v1246_v48, %v1698_v46 }
  0xe8   :  { %v1200_v53 = vpop.f32.mrf.mxu0  ;;  %v1248_v54 = vpop.f32.mrf.mxu1 }
  0xe9   :  { %v1201_v55 = vadd.f32 %v1200_v53, %v1199_v49  ;;  %v1249_v56 = vadd.f32 %v1248_v54, %v1247_v50  ;;  %v512_v63 = vmax.f32 %v386_v51, 0.0  ;;  %v528_v0 = vmax.f32 %v450_v52, 0.0 }
  0xea   :  { %v1202_v57 = vpop.f32.mrf.mxu0  ;;  %v1250_v58 = vpop.f32.mrf.mxu1 }
  0xeb   :  { %v389_v61 = vadd.f32 %v1201_v55, %v1698_v46  ;;  %v453_v62 = vadd.f32 %v1249_v56, %v1698_v46  ;;  %v736_v10 = vmul.f32 %v579_v26, %v512_v63  ;;  %v752_v11 = vmul.f32 %v659_v39, %v528_v0 }
  0xec   :  { %v1203_v2 = vpop.f32.mrf.mxu0  ;;  %v1251_v3 = vpop.f32.mrf.mxu1 }
  0xed   :  { %v513_v4 = vmax.f32 %v389_v61, 0.0  ;;  %v529_v5 = vmax.f32 %v453_v62, 0.0  ;;  %v1204_v6 = vadd.f32 %v1203_v2, %v1202_v57  ;;  %v1252_v7 = vadd.f32 %v1251_v3, %v1250_v58 }
  0xee   :  { %v1205_v8 = vpop.f32.mrf.mxu0  ;;  %v1253_v9 = vpop.f32.mrf.mxu1  ;;  %v768_v24 = vrot.slane %v736_v10, 4  ;;  %v864_v25 = vrot.slane %v752_v11, 4 }
  0xef   :  { %v394_v12 = vadd.f32 %v1204_v6, %v1698_v46  ;;  %v458_v13 = vadd.f32 %v1252_v7, %v1698_v46  ;;  %v737_v18 = vmul.f32 %v584_v28, %v513_v4  ;;  %v753_v19 = vmul.f32 %v664_v44, %v529_v5  ;;  %v1712_v28 = vpop.permute.xlu1 %713  ;;  %v679_v44 = vpop.permute.xlu0 %678 }
  0xf0   :  { %v1206_v14 = vpop.f32.mrf.mxu0  ;;  %v1254_v15 = vpop.f32.mrf.mxu1  ;;  %v769_v51 = vadd.f32 %v768_v24, %v736_v10  ;;  %v865_v52 = vadd.f32 %v864_v25, %v752_v11  ;;  %v1723_v24 = vld [vmem:[%s1889_s0] sm:$0xff]   ;;  %v1728_v25 = vld [vmem:[%s1889_s0 + $0x8] sm:$0xff]  }
  0xf1   :  { %v1207_v20 = vadd.f32 %v1206_v14, %v1205_v8  ;;  %v1255_v21 = vadd.f32 %v1254_v15, %v1253_v9  ;;  %v514_v40 = vmax.f32 %v394_v12, 0.0  ;;  %v530_v26 = vmax.f32 %v458_v13, 0.0 }
  0xf2   :  { %v1208_v22 = vpop.f32.mrf.mxu0  ;;  %v1256_v23 = vpop.f32.mrf.mxu1  ;;  %v774_v47 = vrot.slane %v737_v18, 4  ;;  %v870_v48 = vrot.slane %v753_v19, 4  ;;  %v770_v6 = vrot.slane %v769_v51, 2  ;;  %v866_v7 = vrot.slane %v865_v52, 2 }
  0xf3   :  { %v397_v42 = vadd.f32 %v1207_v20, %v1698_v46  ;;  %v461_v43 = vadd.f32 %v1255_v21, %v1698_v46  ;;  %v738_v53 = vmul.f32 %v1669_v27, %v514_v40  ;;  %v754_v54 = vmul.f32 %v669_v60, %v530_v26  ;;  %v1717_v10 = vpop.permute.xlu1 %718  ;;  %v684_v11 = vpop.permute.xlu0 %683 }
  0xf4   :  { %v1209_v39 = vpop.f32.mrf.mxu0  ;;  %v1257_v41 = vpop.f32.mrf.mxu1  ;;  %v775_v63 = vadd.f32 %v774_v47, %v737_v18  ;;  %v871_v0 = vadd.f32 %v870_v48, %v753_v19  ;;  %1892 = vst [vmem:[#allocation3_spill] sm:$0xff] %v1717_v10 }
  0xf5   :  { %v515_v57 = vmax.f32 %v397_v42, 0.0  ;;  %v531_v58 = vmax.f32 %v461_v43, 0.0  ;;  %v1210_v61 = vadd.f32 %v1209_v39, %v1208_v22  ;;  %v1258_v62 = vadd.f32 %v1257_v41, %v1256_v23 }
  0xf6   :  { %v1211_v49 = vpop.f32.mrf.mxu0  ;;  %v1259_v50 = vpop.f32.mrf.mxu1  ;;  %v780_v8 = vrot.slane %v738_v53, 4  ;;  %v876_v9 = vrot.slane %v754_v54, 4  ;;  %v776_v14 = vrot.slane %v775_v63, 2  ;;  %v872_v15 = vrot.slane %v871_v0, 2 }
  0xf7   :  { %v402_v4 = vadd.f32 %v1210_v61, %v1698_v46  ;;  %v466_v5 = vadd.f32 %v1258_v62, %v1698_v46  ;;  %v739_v12 = vmul.f32 %v1671_v29, %v515_v57  ;;  %v755_v13 = vmul.f32 %v674_v17, %v531_v58 }
  0xf8   :  { %v1212_v55 = vpop.f32.mrf.mxu0  ;;  %v1260_v56 = vpop.f32.mrf.mxu1  ;;  %v771_v29 = vadd.f32 %v770_v6, %v769_v51  ;;  %v867_v17 = vadd.f32 %v866_v7, %v865_v52  ;;  %v781_v40 = vadd.f32 %v780_v8, %v738_v53  ;;  %v877_v26 = vadd.f32 %v876_v9, %v754_v54 }
  0xf9   :  { %v516_v20 = vmax.f32 %v402_v4, 0.0  ;;  %v532_v21 = vmax.f32 %v466_v5, 0.0  ;;  %v1213_v22 = vadd.f32 %v1212_v55, %v1211_v49  ;;  %v1261_v23 = vadd.f32 %v1260_v56, %v1259_v50  ;;  %v1738_v52 = vpop.permute.xlu1 %723  ;;  %v1740_v53 = vpop.permute.xlu0 %648 }
  0xfa   :  { %v1214_v2 = vpop.f32.mrf.mxu0  ;;  %v1262_v3 = vpop.f32.mrf.mxu1  ;;  %v786_v42 = vrot.slane %v739_v12, 4  ;;  %v882_v43 = vrot.slane %v755_v13, 4  ;;  %v777_v49 = vadd.f32 %v776_v14, %v775_v63  ;;  %v873_v50 = vadd.f32 %v872_v15, %v871_v0  ;;  %1893 = vst [vmem:[#allocation4_spill] sm:$0xff] %v1738_v52  ;;  %1894 = vst [vmem:[#allocation5_spill] sm:$0xff] %v1740_v53 }
  0xfb   :  { %v405_v47 = vadd.f32 %v1213_v22, %v1698_v46  ;;  %v469_v48 = vadd.f32 %v1261_v23, %v1698_v46  ;;  %v740_v54 = vmul.f32 %v1673_v30, %v516_v20  ;;  %v756_v58 = vmul.f32 %v679_v44, %v532_v21 }
  0xfc   :  { %v1215_v27 = vpop.f32.mrf.mxu0  ;;  %v1263_v60 = vpop.f32.mrf.mxu1  ;;  %v772_v4 = vrot.slane %v771_v29, 1  ;;  %v868_v63 = vrot.slane %v867_v17, 1  ;;  %v782_v8 = vrot.slane %v781_v40, 2  ;;  %v878_v9 = vrot.slane %v877_v26, 2 }
  0xfd   :  { %v517_v61 = vmax.f32 %v405_v47, 0.0  ;;  %v533_v62 = vmax.f32 %v469_v48, 0.0  ;;  %v1216_v0 = vadd.f32 %v1215_v27, %v1214_v2  ;;  %v1264_v5 = vadd.f32 %v1263_v60, %v1262_v3  ;;  %v689_v47 = vpop.permute.xlu1 %688  ;;  %v1754_v48 = vpop.permute.xlu0 %728 }
  0xfe   :  { %v1217_v18 = vpop.f32.mrf.mxu0  ;;  %v1265_v19 = vpop.f32.mrf.mxu1  ;;  %v787_v14 = vadd.f32 %v786_v42, %v739_v12  ;;  %v883_v15 = vadd.f32 %v882_v43, %v755_v13  ;;  %v778_v22 = vrot.slane %v777_v49, 1  ;;  %v874_v23 = vrot.slane %v873_v50, 1  ;;  %1895 = vst [vmem:[#allocation6_spill] sm:$0xff] %v1754_v48 }
  0xff   :  { %v410_v56 = vadd.f32 %v1216_v0, %v1698_v46  ;;  %v474_v55 = vadd.f32 %v1264_v5, %v1698_v46  ;;  %v792_v20 = vrot.slane %v740_v54, 4  ;;  %v888_v2 = vrot.slane %v756_v58, 4 }
 0x100   :  { %v1218_v39 = vpop.f32.mrf.mxu0  ;;  %v1266_v41 = vpop.f32.mrf.mxu1  ;;  %v741_v3 = vmul.f32 %v1675_v31, %v517_v61  ;;  %v757_v27 = vmul.f32 %v684_v11, %v533_v62  ;;  %v783_v0 = vadd.f32 %v782_v8, %v781_v40  ;;  %v879_v5 = vadd.f32 %v878_v9, %v877_v26 }
 0x101   :  { %v518_v60 = vmax.f32 %v410_v56, 0.0  ;;  %v534_v21 = vmax.f32 %v474_v55, 0.0  ;;  %v1219_v12 = vadd.f32 %v1218_v39, %v1217_v18  ;;  %v1267_v13 = vadd.f32 %v1266_v41, %v1265_v19 }
 0x102   :  { %v1734_v57 = vpop.f32.mrf.mxu0  ;;  %v1736_v51 = vpop.f32.mrf.mxu1  ;;  %v788_v53 = vrot.slane %v787_v14, 2  ;;  %v884_v52 = vrot.slane %v883_v15, 2  ;;  %v773_v39 = vadd.f32 %v772_v4, %v771_v29  ;;  %v869_v41 = vadd.f32 %v868_v63, %v867_v17 }
 0x103   :  { %v742_v38 = vmul.f32 %v1677_v32, %v518_v60  ;;  %v758_v10 = vmul.f32 %v689_v47, %v534_v21  ;;  %v413_v31 = vadd.f32 %v1219_v12, %v1698_v46  ;;  %v477_v11 = vadd.f32 %v1267_v13, %v1698_v46  ;;  %v694_v17 = vpop.permute.xlu0 %693 }
 0x104   :  { %v1221_v6 = vpop.f32.mrf.mxu0  ;;  %v1269_v7 = vpop.f32.mrf.mxu1  ;;  %v793_v55 = vadd.f32 %v792_v20, %v740_v54  ;;  %v889_v56 = vadd.f32 %v888_v2, %v756_v58  ;;  %v798_v61 = vrot.slane %v741_v3, 4  ;;  %v894_v40 = vrot.slane %v757_v27, 4 }
 0x105   :  { %v519_v26 = vmax.f32 %v413_v31, 0.0  ;;  %v535_v62 = vmax.f32 %v477_v11, 0.0  ;;  %v779_v9 = vadd.f32 %v778_v22, %v777_v49  ;;  %v875_v60 = vadd.f32 %v874_v23, %v873_v50 }
 0x106   :  { %v1745_v30 = vpop.f32.mrf.mxu0  ;;  %v1747_v44 = vpop.f32.mrf.mxu1  ;;  %v804_v21 = vrot.slane %v742_v38, 4  ;;  %v900_v12 = vrot.slane %v758_v10, 4  ;;  %v784_v13 = vrot.slane %v783_v0, 1  ;;  %v880_v47 = vrot.slane %v879_v5, 1 }
 0x107   :  { %v789_v48 = vadd.f32 %v788_v53, %v787_v14  ;;  %v885_v29 = vadd.f32 %v884_v52, %v883_v15  ;;  %v794_v54 = vrot.slane %v793_v55, 2  ;;  %v890_v58 = vrot.slane %v889_v56, 2 }
 0x108   :  { %v1750_v42 = vpop.f32.mrf.mxu0  ;;  %v1752_v43 = vpop.f32.mrf.mxu1  ;;  %v1222_v4 = vadd.f32 %v1221_v6, %v1734_v57  ;;  %v1270_v63 = vadd.f32 %v1269_v7, %v1736_v51  ;;  %v799_v20 = vadd.f32 %v798_v61, %v741_v3  ;;  %v895_v2 = vadd.f32 %v894_v40, %v757_v27 }
 0x109   :  { %v743_v49 = vmul.f32 %v1679_v33, %v519_v26  ;;  %v759_v50 = vmul.f32 %v694_v17, %v535_v62  ;;  %v805_v31 = vadd.f32 %v804_v21, %v742_v38  ;;  %v901_v53 = vadd.f32 %v900_v12, %v758_v10 }
 0x10a   :  { %v1759_v18 = vpop.f32.mrf.mxu0  ;;  %v1761_v19 = vpop.f32.mrf.mxu1  ;;  %v418_v52 = vadd.f32 %v1222_v4, %v1698_v46  ;;  %v482_v14 = vadd.f32 %v1270_v63, %v1698_v46  ;;  %v1009_v57 = vsel %vm1008_vm4, %v779_v9, %v773_v39  ;;  %v1029_v51 = vsel %vm1008_vm4, %v875_v60, %v869_v41 }
 0x10b   :  { %v790_v6 = vrot.slane %v789_v48, 1  ;;  %v886_v7 = vrot.slane %v885_v29, 1  ;;  %v795_v15 = vadd.f32 %v794_v54, %v793_v55  ;;  %v891_v3 = vadd.f32 %v890_v58, %v889_v56 }
 0x10c   :  { %v1763_v8 = vpop.f32.mrf.mxu0  ;;  %v1765_v32 = vpop.f32.mrf.mxu1  ;;  %v520_v33 = vmax.f32 %v418_v52, 0.0  ;;  %v536_v27 = vmax.f32 %v482_v14, 0.0  ;;  %v785_v11 = vadd.f32 %v784_v13, %v783_v0  ;;  %v881_v61 = vadd.f32 %v880_v47, %v879_v5 }
 0x10d   :  { %v810_v40 = vrot.slane %v743_v49, 4  ;;  %v906_v38 = vrot.slane %v759_v50, 4  ;;  %v800_v62 = vrot.slane %v799_v20, 2  ;;  %v896_v21 = vrot.slane %v895_v2, 2 }
 0x10e   :  { %v1770_v22 = vpop.f32.mrf.mxu0  ;;  %v1772_v23 = vpop.f32.mrf.mxu1  ;;  %v806_v39 = vrot.slane %v805_v31, 2  ;;  %v902_v9 = vrot.slane %v901_v53, 2  ;;  %v744_v41 = vmul.f32 %v1681_v34, %v520_v33  ;;  %v760_v55 = vmul.f32 %v1693_v45, %v536_v27 }
 0x10f   :  { %v1225_v56 = vadd.f32 %v1750_v42, %v1745_v30  ;;  %v1273_v0 = vadd.f32 %v1752_v43, %v1747_v44  ;;  %v791_v5 = vadd.f32 %v790_v6, %v789_v48  ;;  %v887_v60 = vadd.f32 %v886_v7, %v885_v29 }
 0x110   :  { %v1778_v10 = vpop.f32.mrf.mxu0  ;;  %v1780_v26 = vpop.f32.mrf.mxu1  ;;  %v796_v12 = vrot.slane %v795_v15, 1  ;;  %v892_v13 = vrot.slane %v891_v3, 1  ;;  %v1011_v47 = vsel %vm1010_vm5, %v785_v11, %v1009_v57  ;;  %v1030_v17 = vsel %vm1010_vm5, %v881_v61, %v1029_v51 }
 0x111   :  { %v811_v54 = vadd.f32 %v810_v40, %v743_v49  ;;  %v907_v58 = vadd.f32 %v906_v38, %v759_v50  ;;  %v801_v63 = vadd.f32 %v800_v62, %v799_v20  ;;  %v897_v45 = vadd.f32 %v896_v21, %v895_v2 }
 0x112   :  { %v1232_v4 = vpop.f32.mrf.mxu0  ;;  %v1280_v34 = vpop.f32.mrf.mxu1  ;;  %v807_v52 = vadd.f32 %v806_v39, %v805_v31  ;;  %v903_v14 = vadd.f32 %v902_v9, %v901_v53  ;;  %v816_v30 = vrot.slane %v744_v41, 4  ;;  %v912_v42 = vrot.slane %v760_v55, 4 }
 0x113   :  { %v421_v44 = vadd.f32 %v1225_v56, %v1698_v46  ;;  %v485_v43 = vadd.f32 %v1273_v0, %v1698_v46  ;;  %v1013_v48 = vsel %vm1012_vm6, %v791_v5, %v1011_v47  ;;  %v1031_v29 = vsel %vm1012_vm6, %v887_v60, %v1030_v17 }
 0x114   :  { %v797_v57 = vadd.f32 %v796_v12, %v795_v15  ;;  %v893_v51 = vadd.f32 %v892_v13, %v891_v3  ;;  %v812_v49 = vrot.slane %v811_v54, 2  ;;  %v908_v50 = vrot.slane %v907_v58, 2  ;;  %v1233_v31 = vpop.f32.mrf.mxu0  ;;  %v1281_v53 = vpop.f32.mrf.mxu1 }
 0x115   :  { %v1228_v20 = vadd.f32 %v1763_v8, %v1759_v18  ;;  %v1276_v2 = vadd.f32 %v1765_v32, %v1761_v19  ;;  %v802_v6 = vrot.slane %v801_v63, 1  ;;  %v898_v7 = vrot.slane %v897_v45, 1 }
 0x116   :  { %v808_v33 = vrot.slane %v807_v52, 1  ;;  %v904_v27 = vrot.slane %v903_v14, 1  ;;  %v817_v11 = vadd.f32 %v816_v30, %v744_v41  ;;  %v913_v61 = vadd.f32 %v912_v42, %v760_v55  ;;  %v1235_v39 = vpop.f32.mrf.mxu0  ;;  %v1283_v9 = vpop.f32.mrf.mxu1 }
 0x117   :  { %v521_v40 = vmax.f32 %v421_v44, 0.0  ;;  %v537_v15 = vmax.f32 %v485_v43, 0.0  ;;  %v1015_v3 = vsel %vm1014_vm7, %v797_v57, %v1013_v48  ;;  %v1032_v38 = vsel %vm1014_vm7, %v893_v51, %v1031_v29 }
 0x118   :  { %v1163_v18 = vunpack.c.h.bf16 %v1723_v24  ;;  %v1167_v19 = vunpack.c.h.bf16 %v1728_v25  ;;  %v813_v8 = vadd.f32 %v812_v49, %v811_v54  ;;  %v909_v32 = vadd.f32 %v908_v50, %v907_v58  ;;  %v1284_v42 = vpop.f32.mrf.mxu1 }
 0x119   :  { %v426_v62 = vadd.f32 %v1228_v20, %v1698_v46  ;;  %v490_v21 = vadd.f32 %v1276_v2, %v1698_v46  ;;  %v803_v41 = vadd.f32 %v802_v6, %v801_v63  ;;  %v899_v55 = vadd.f32 %v898_v7, %v897_v45 }
 0x11a   :  { %v809_v56 = vadd.f32 %v808_v33, %v807_v52  ;;  %v905_v0 = vadd.f32 %v904_v27, %v903_v14  ;;  %v818_v5 = vrot.slane %v817_v11, 2  ;;  %v914_v60 = vrot.slane %v913_v61, 2  ;;  %v1236_v14 = vpop.f32.mrf.mxu0  ;;  %v1286_v2 = vpop.f32.mrf.mxu1 }
 0x11b   :  { %v745_v12 = vmul.f32 %v1683_v1, %v521_v40  ;;  %v761_v13 = vmul.f32 %v1702_v59, %v537_v15  ;;  %v1231_v47 = vadd.f32 %v1778_v10, %v1770_v22  ;;  %v1279_v17 = vadd.f32 %v1780_v26, %v1772_v23 }
 0x11c   :  { %v1234_v54 = vadd.f32 %v1233_v31, %v1232_v4  ;;  %v1282_v58 = vadd.f32 %v1281_v53, %v1280_v34  ;;  %v814_v30 = vrot.slane %v813_v8, 1  ;;  %v910_v63 = vrot.slane %v909_v32, 1  ;;  %v1238_v20 = vpop.f32.mrf.mxu0 }
 0x11d   :  { %v522_v45 = vmax.f32 %v426_v62, 0.0  ;;  %v538_v52 = vmax.f32 %v490_v21, 0.0  ;;  %v429_v44 = vadd.f32 %v1231_v47, %v1698_v46  ;;  %v493_v1 = vadd.f32 %v1279_v17, %v1698_v46  ;;  %v1287_v62 = vpop.f32.mrf.mxu1 }
 0x11e   :  { %v434_v59 = vadd.f32 %v1234_v54, %v1698_v46  ;;  %v498_v43 = vadd.f32 %v1282_v58, %v1698_v46  ;;  %v819_v22 = vadd.f32 %v818_v5, %v817_v11  ;;  %v915_v10 = vadd.f32 %v914_v60, %v913_v61 }
 0x11f   :  { %v822_v48 = vrot.slane %v745_v12, 4  ;;  %v918_v23 = vrot.slane %v761_v13, 4  ;;  %v523_v26 = vmax.f32 %v429_v44, 0.0  ;;  %v539_v4 = vmax.f32 %v493_v1, 0.0  ;;  %v1897_v44 = vld [vmem:[#allocation2_spill] sm:$0xff] }
 0x120   :  { %v524_v34 = vmax.f32 %v434_v59, 0.0  ;;  %v540_v29 = vmax.f32 %v498_v43, 0.0  ;;  %v1017_v57 = vsel %vm1016_vm8, %v803_v41, %v1015_v3  ;;  %v1033_v51 = vsel %vm1016_vm8, %v899_v55, %v1032_v38  ;;  %v1896_v38 = vld [vmem:[#allocation3_spill] sm:$0xff]  ;;  %v1898_v59 = vld [vmem:[#allocation4_spill] sm:$0xff] }
 0x121   :  { %v815_v49 = vadd.f32 %v814_v30, %v813_v8  ;;  %v911_v50 = vadd.f32 %v910_v63, %v909_v32  ;;  %v746_v31 = vmul.f32 %v1685_v35, %v522_v45  ;;  %v762_v53 = vmul.f32 %v1708_v16, %v538_v52  ;;  %v1239_v32 = vpop.f32.mrf.mxu0  ;;  %v1289_v63 = vpop.f32.mrf.mxu1 }
 0x122   :  { %v747_v6 = vmul.f32 %v1687_v36, %v523_v26  ;;  %v763_v7 = vmul.f32 %v1712_v28, %v539_v4  ;;  %v1019_v33 = vsel %vm1018_vm9, %v809_v56, %v1017_v57  ;;  %v1034_v27 = vsel %vm1018_vm9, %v905_v0, %v1033_v51 }
 0x123   :  { %v820_v11 = vrot.slane %v819_v22, 1  ;;  %v916_v61 = vrot.slane %v915_v10, 1  ;;  %v823_v40 = vadd.f32 %v822_v48, %v745_v12  ;;  %v919_v15 = vadd.f32 %v918_v23, %v761_v13  ;;  %v1241_v30 = vpop.f32.mrf.mxu0 }
 0x124   :  { %v748_v3 = vmul.f32 %v1689_v37, %v524_v34  ;;  %v764_v8 = vmul.f32 %v1896_v38, %v540_v29  ;;  %v1825_v35 = vsel %vm1020_vm10, %v815_v49, %v1019_v33  ;;  %v1828_v16 = vsel %vm1020_vm10, %v911_v50, %v1034_v27  ;;  %v1290_v50 = vpop.f32.mrf.mxu1  ;;  %v1899_v27 = vld [vmem:[#allocation5_spill] sm:$0xff] }
 0x125   :  { %v1237_v36 = vadd.f32 %v1236_v14, %v1235_v39  ;;  %v1285_v28 = vadd.f32 %v1284_v42, %v1283_v9  ;;  %v828_v21 = vrot.slane %v746_v31, 4  ;;  %v924_v41 = vrot.slane %v762_v53, 4  ;;  %v1242_v49 = vpop.f32.mrf.mxu0 }
 0x126   :  { %v834_v55 = vrot.slane %v747_v6, 4  ;;  %v930_v56 = vrot.slane %v763_v7, 4  ;;  %v1830_v0 = vadd.f32 %v820_v11, %v819_v22  ;;  %v1832_v5 = vadd.f32 %v916_v61, %v915_v10  ;;  %v1900_v61 = vld [vmem:[#allocation6_spill] sm:$0xff] }
 0x127   :  { %v437_v37 = vadd.f32 %v1237_v36, %v1698_v46  ;;  %v501_v60 = vadd.f32 %v1285_v28, %v1698_v46  ;;  %v824_v12 = vrot.slane %v823_v40, 2  ;;  %v920_v13 = vrot.slane %v919_v15, 2 }
 0x128   :  { %v840_v47 = vrot.slane %v748_v3, 4  ;;  %v936_v17 = vrot.slane %v764_v8, 4  ;;  %v1240_v54 = vadd.f32 %v1239_v32, %v1238_v20  ;;  %v1288_v58 = vadd.f32 %v1287_v62, %v1286_v2 }
 0x129   :  { %v525_v39 = vmax.f32 %v437_v37, 0.0  ;;  %v541_v9 = vmax.f32 %v501_v60, 0.0  ;;  %v829_v45 = vadd.f32 %v828_v21, %v746_v31  ;;  %v925_v52 = vadd.f32 %v924_v41, %v762_v53 }
 0x12a   :  { %v835_v14 = vadd.f32 %v834_v55, %v747_v6  ;;  %v931_v42 = vadd.f32 %v930_v56, %v763_v7  ;;  %v442_v22 = vadd.f32 %v1240_v54, %v1698_v46  ;;  %v506_v10 = vadd.f32 %v1288_v58, %v1698_v46  ;;  %v654_v6 = vpop.permute.xlu1 %653 }
 0x12b   :  { %v749_v1 = vmul.f32 %v1897_v44, %v525_v39  ;;  %v765_v43 = vmul.f32 %v1898_v59, %v541_v9  ;;  %v825_v48 = vadd.f32 %v824_v12, %v823_v40  ;;  %v921_v23 = vadd.f32 %v920_v13, %v919_v15 }
 0x12c   :  { %v841_v26 = vadd.f32 %v840_v47, %v748_v3  ;;  %v937_v4 = vadd.f32 %v936_v17, %v764_v8  ;;  %v526_v57 = vmax.f32 %v442_v22, 0.0  ;;  %v542_v51 = vmax.f32 %v506_v10, 0.0 }
 0x12d   :  { %v846_v34 = vrot.slane %v749_v1, 4  ;;  %v942_v29 = vrot.slane %v765_v43, 4  ;;  %v830_v20 = vrot.slane %v829_v45, 2  ;;  %v926_v2 = vrot.slane %v925_v52, 2 }
 0x12e   :  { %v836_v31 = vrot.slane %v835_v14, 2  ;;  %v932_v53 = vrot.slane %v931_v42, 2  ;;  %v750_v11 = vmul.f32 %v1899_v27, %v526_v57  ;;  %v766_v40 = vmul.f32 %v1900_v61, %v542_v51  ;;  %v734_v54 = vpop.permute.xlu1 %733 }
 0x12f   :  { %v847_v7 = vadd.f32 %v846_v34, %v749_v1  ;;  %v943_v33 = vadd.f32 %v942_v29, %v765_v43  ;;  %v826_v15 = vrot.slane %v825_v48, 1  ;;  %v922_v3 = vrot.slane %v921_v23, 1 }
 0x130   :  { %v1243_v38 = vadd.f32 %v1242_v49, %v1241_v30  ;;  %v1291_v8 = vadd.f32 %v1290_v50, %v1289_v63  ;;  %v842_v36 = vrot.slane %v841_v26, 2  ;;  %v938_v28 = vrot.slane %v937_v4, 2 }
 0x131   :  { %v848_v32 = vrot.slane %v847_v7, 2  ;;  %v944_v62 = vrot.slane %v943_v33, 2  ;;  %v852_v21 = vrot.slane %v750_v11, 4  ;;  %v948_v41 = vrot.slane %v766_v40, 4 }
 0x132   :  { %v445_v55 = vadd.f32 %v1243_v38, %v1698_v46  ;;  %v509_v56 = vadd.f32 %v1291_v8, %v1698_v46  ;;  %v831_v37 = vadd.f32 %v830_v20, %v829_v45  ;;  %v927_v60 = vadd.f32 %v926_v2, %v925_v52 }
 0x133   :  { %v837_v12 = vadd.f32 %v836_v31, %v835_v14  ;;  %v933_v13 = vadd.f32 %v932_v53, %v931_v42  ;;  %v853_v47 = vadd.f32 %v852_v21, %v750_v11  ;;  %v949_v17 = vadd.f32 %v948_v41, %v766_v40 }
 0x134   :  { %v527_v39 = vmax.f32 %v445_v55, 0.0  ;;  %v543_v9 = vmax.f32 %v509_v56, 0.0  ;;  %v843_v58 = vadd.f32 %v842_v36, %v841_v26  ;;  %v939_v30 = vadd.f32 %v938_v28, %v937_v4  ;;  %v1064_v28 = vpop.permute.xlu1 %1063 }
 0x135   :  { %v849_v63 = vadd.f32 %v848_v32, %v847_v7  ;;  %v945_v44 = vadd.f32 %v944_v62, %v943_v33  ;;  %v854_v1 = vrot.slane %v853_v47, 2  ;;  %v950_v59 = vrot.slane %v949_v17, 2  ;;  %v1061_v32 = vpop.permute.xlu0 %1060 }
 0x136   :  { %v751_v43 = vmul.f32 %v654_v6, %v527_v39  ;;  %v767_v22 = vmul.f32 %v734_v54, %v543_v9  ;;  %v832_v10 = vrot.slane %v831_v37, 1  ;;  %v928_v34 = vrot.slane %v927_v60, 1 }
 0x137   :  { %v838_v46 = vrot.slane %v837_v12, 1  ;;  %v934_v45 = vrot.slane %v933_v13, 1  ;;  %v855_v52 = vadd.f32 %v854_v1, %v853_v47  ;;  %v951_v14 = vadd.f32 %v950_v59, %v949_v17 }
 0x138   :  { %v858_v42 = vrot.slane %v751_v43, 4  ;;  %v954_v29 = vrot.slane %v767_v22, 4  ;;  %v827_v57 = vadd.f32 %v826_v15, %v825_v48  ;;  %v923_v51 = vadd.f32 %v922_v3, %v921_v23  ;;  %v1070_v59 = vpop.permute.xlu1 %1069 }
 0x139   :  { %v844_v49 = vrot.slane %v843_v58, 1  ;;  %v940_v50 = vrot.slane %v939_v30, 1  ;;  %v850_v26 = vrot.slane %v849_v63, 1  ;;  %v946_v4 = vrot.slane %v945_v44, 1 }
 0x13a   :  { %v859_v20 = vadd.f32 %v858_v42, %v751_v43  ;;  %v955_v2 = vadd.f32 %v954_v29, %v767_v22  ;;  %v833_v31 = vadd.f32 %v832_v10, %v831_v37  ;;  %v929_v53 = vadd.f32 %v928_v34, %v927_v60 }
 0x13b   :  { %v856_v6 = vrot.slane %v855_v52, 1  ;;  %v952_v7 = vrot.slane %v951_v14, 1  ;;  %v839_v33 = vadd.f32 %v838_v46, %v837_v12  ;;  %v935_v27 = vadd.f32 %v934_v45, %v933_v13 }
 0x13c   :  { %v860_v11 = vrot.slane %v859_v20, 2  ;;  %v956_v61 = vrot.slane %v955_v2, 2  ;;  %v1022_v40 = vsel %vm1008_vm4, %v827_v57, %v1830_v0  ;;  %v1036_v48 = vsel %vm1008_vm4, %v923_v51, %v1832_v5 }
 0x13d   :  { %v845_v23 = vadd.f32 %v844_v49, %v843_v58  ;;  %v941_v15 = vadd.f32 %v940_v50, %v939_v30  ;;  %v851_v3 = vadd.f32 %v850_v26, %v849_v63  ;;  %v947_v38 = vadd.f32 %v946_v4, %v945_v44 }
 0x13e   :  { %v861_v8 = vadd.f32 %v860_v11, %v859_v20  ;;  %v957_v36 = vadd.f32 %v956_v61, %v955_v2  ;;  %v1023_v62 = vsel %vm1010_vm5, %v833_v31, %v1022_v40  ;;  %v1037_v21 = vsel %vm1010_vm5, %v929_v53, %v1036_v48 }
 0x13f   :  { %v857_v41 = vadd.f32 %v856_v6, %v855_v52  ;;  %v953_v55 = vadd.f32 %v952_v7, %v951_v14  ;;  %v1024_v56 = vsel %vm1012_vm6, %v839_v33, %v1023_v62  ;;  %v1038_v0 = vsel %vm1012_vm6, %v935_v27, %v1037_v21 }
 0x140   :  { %v862_v37 = vrot.slane %v861_v8, 1  ;;  %v958_v5 = vrot.slane %v957_v36, 1  ;;  %v1901_v60 = vunpack.c.l.bf16 %v1723_v24  ;;  %v1902_v13 = vunpack.c.l.bf16 %v1728_v25 }
 0x141   :  { %v1025_v17 = vsel %vm1014_vm7, %v845_v23, %v1024_v56  ;;  %v1039_v39 = vsel %vm1014_vm7, %v941_v15, %v1038_v0  ;;  %vm1072_vm11 = vcmp.eq.s32.totalorder %v1064_v28, 1  ;;  %vm1071_vm12 = vcmp.eq.s32.totalorder %v1061_v32, 1 }
 0x142   :  { %v1047_v12 = vadd.f32 %v1901_v60, %v1825_v35  ;;  %v1049_v47 = vadd.f32 %v1902_v13, %v1828_v16  ;;  %v1026_v9 = vsel %vm1016_vm8, %v851_v3, %v1025_v17  ;;  %v1040_v54 = vsel %vm1016_vm8, %v947_v38, %v1039_v39  ;;  %v1067_v16 = vpop.permute.xlu0 %1066 }
 0x143   :  { %v863_v58 = vadd.f32 %v862_v37, %v861_v8  ;;  %v959_v30 = vadd.f32 %v958_v5, %v957_v36  ;;  %v1027_v63 = vsel %vm1018_vm9, %v857_v41, %v1026_v9  ;;  %v1041_v44 = vsel %vm1018_vm9, %v953_v55, %v1040_v54 }
 0x144   :  { %v1051_v43 = vmul.f32 0.5, %v1047_v12  ;;  %v1053_v22 = vmul.f32 0.5, %v1049_v47  ;;  %vm1074_vm13 = vcmp.eq.s32.totalorder %v1070_v59, 1  ;;  %vm1073_vm14 = vcmp.eq.s32.totalorder %v1067_v16, 1 }
 0x145   :  { %v1028_v35 = vsel %vm1020_vm10, %v863_v58, %v1027_v63  ;;  %v1042_v1 = vsel %vm1020_vm10, %v959_v30, %v1041_v44  ;;  %v1903_v52 = vmov %v1901_v60  ;;  %v1904_v42 = vmov %v1902_v13 }
 0x146   :  { %v1048_v10 = vadd.f32 %v1163_v18, %v1028_v35  ;;  %v1050_v34 = vadd.f32 %v1167_v19, %v1042_v1  ;;  %v1075_v14 = vsel %vm1071_vm12, %v1051_v43, %v1903_v52  ;;  %v1077_v29 = vsel %vm1073_vm14, %v1053_v22, %v1904_v42 }
 0x148   :  { %v1052_v46 = vmul.f32 0.5, %v1048_v10  ;;  %v1054_v45 = vmul.f32 0.5, %v1050_v34 }
 0x14a   :  { %v1076_v57 = vsel %vm1072_vm11, %v1052_v46, %v1163_v18  ;;  %v1078_v51 = vsel %vm1074_vm13, %v1054_v45, %v1167_v19 }
 0x14b   :  { %v1171_v49 = vpack.c.bf16 %v1076_v57, %v1075_v14  ;;  %v1176_v50 = vpack.c.bf16 %v1078_v51, %v1077_v29 }
 0x14d   :  { %1172 = vst [vmem:[%s1890_s6] sm:$0xff] %v1171_v49   ;;  %1179 = vst [vmem:[%s1890_s6 + $0x8] sm:$0xff] %v1176_v50  }

// kernel: graphnn_knn_v2_forward.25
= control target key start
LH: loop header
LB: loop body
LE: loop exit
PB: predicated region body
PF: predicated region fallthrough
CT: control target
= control target key end

     0   :  { %s304_s1 = inlined_call_operand.vmem [shape: bf16[128,128], index: 1, kind: input, shape index: {}]   ;;  %s305_s0 = inlined_call_operand.vmem [shape: bf16[32,128], index: 0, kind: input, shape index: {}]   ;;  %s306_s2 = inlined_call_operand.vmem [shape: f32[1,128], index: 2, kind: input, shape index: {}]   ;;  %s307_s3 = inlined_call_operand.vmem [shape: bf16[32,128], index: 3, kind: output, shape index: {}]  }
   0x1   :  { %v235_v0 = vld [vmem:[%s304_s1 + $0x38] sm:$0xff]   ;;  %v236_v1 = vld [vmem:[%s304_s1 + $0x30] sm:$0xff]   ;;  %v237_v2 = vld [vmem:[%s304_s1 + $0x28] sm:$0xff]  }
   0x2   :  { %215 = vmatprep.subr.bf16.mxu0 %v235_v0  ;;  %v238_v3 = vld [vmem:[%s304_s1 + $0x20] sm:$0xff]   ;;  %v239_v5 = vld [vmem:[%s304_s1 + $0x18] sm:$0xff]   ;;  %v240_v6 = vld [vmem:[%s304_s1 + $0x10] sm:$0xff]  }
   0x3   :  { %216 = vmatpush3.bf16.msra.mxu0 %v235_v0  ;;  %v243_v4 = vld [vmem:[%s305_s0] sm:$0xff]   ;;  %v241_v7 = vld [vmem:[%s304_s1 + $0x8] sm:$0xff]  }
   0x4   :  { %217 = vmatprep.subr.bf16.mxu0 %v236_v1  ;;  %231 = vmatprep.mubr.bf16.mxu0 %v243_v4  ;;  %v242_v8 = vld [vmem:[%s304_s1] sm:$0xff]   ;;  %v244_v9 = vld [vmem:[%s305_s0 + $0x8] sm:$0xff]  }
   0x5   :  { %v175_v11 = vld [vmem:[%s306_s2] ss:$0 sm:$0xff] }
   0x7   :  { %218 = vmatpush3.bf16.msra.mxu0 %v236_v1 }
   0x8   :  { %219 = vmatprep.subr.bf16.mxu0 %v237_v2 }
   0xb   :  { %220 = vmatpush3.bf16.msra.mxu0 %v237_v2 }
   0xc   :  { %221 = vmatprep.subr.bf16.mxu0 %v238_v3 }
   0xf   :  { %222 = vmatpush3.bf16.msra.mxu0 %v238_v3 }
  0x10   :  { %223 = vmatprep.subr.bf16.mxu0 %v239_v5 }
  0x13   :  { %224 = vmatpush3.bf16.msra.mxu0 %v239_v5 }
  0x14   :  { %225 = vmatprep.subr.bf16.mxu0 %v240_v6 }
  0x17   :  { %226 = vmatpush3.bf16.msra.mxu0 %v240_v6 }
  0x18   :  { %227 = vmatprep.subr.bf16.mxu0 %v241_v7 }
  0x1b   :  { %228 = vmatpush3.bf16.msra.mxu0 %v241_v7 }
  0x1c   :  { %229 = vmatprep.subr.bf16.mxu0 %v242_v8 }
  0x1f   :  { %230 = vmatpush3.bf16.msra.mxu0 %v242_v8 }
  0x22   :  { %232 = vmatmul.mubr.bf16.vlgmr.msra.gmra.mxu0 %v244_v9 }
  0xe2   :  { %v233_v10 = vpop.f32.mrf.mxu0 }
  0xe3   :  { %v145_v14 = vadd.f32 %v233_v10, %v175_v11 }
  0xe4   :  { %v136_v12 = vpop.f32.mrf.mxu0 }
  0xe5   :  { %v137_v17 = vadd.f32 %v175_v11, %v136_v12 }
  0xe6   :  { %v234_v13 = vpop.f32.mrf.mxu0 }
  0xe7   :  { %v148_v15 = vadd.f32 %v234_v13, %v175_v11 }
  0xe8   :  { %v139_v16 = vpop.f32.mrf.mxu0 }
  0xe9   :  { %v202_v18 = vpack.c.bf16 %v148_v15, %v145_v14  ;;  %v140_v19 = vadd.f32 %v175_v11, %v139_v16 }
  0xeb   :  { %204 = vst [vmem:[%s307_s3 + $0x8] sm:$0xff] %v202_v18   ;;  %v197_v20 = vpack.c.bf16 %v140_v19, %v137_v17 }
  0xed   :  { %198 = vst [vmem:[%s307_s3] sm:$0xff] %v197_v20  }

// kernel: graphnn_knn_v2_forward.22
= control target key start
LH: loop header
LB: loop body
LE: loop exit
PB: predicated region body
PF: predicated region fallthrough
CT: control target
= control target key end

     0   :  { %v1443_v1 = vmov 0   ;;  %s2084_s3 = inlined_call_operand.vmem [shape: bf16[256,128], index: 3, kind: input, shape index: {}]   ;;  %s2085_s0 = inlined_call_operand.vmem [shape: bf16[256,256], index: 0, kind: input, shape index: {}]   ;;  %s2086_s1 = inlined_call_operand.vmem [shape: f32[256,1], index: 1, kind: input, shape index: {}]   ;;  %s2087_s2 = inlined_call_operand.vmem [shape: f32[32,1], index: 2, kind: input, shape index: {}]   ;;  %s2088_s4 = inlined_call_operand.vmem [shape: f32[1,128], index: 4, kind: input, shape index: {}]   ;;  %s2089_s5 = inlined_call_operand.vmem [shape: bf16[32,128], index: 5, kind: output, shape index: {}]  }
   0x1   :  { %v1315_v0 = vld [vmem:[%s2084_s3 + $0x78] sm:$0xff]   ;;  %1314 = vset.pattern.permute.xlu1 %v1443_v1  ;;  %1313 = vset.pattern.permute.xlu0 %v1443_v1  ;;  %v1317_v3 = vld [vmem:[%s2084_s3 + $0x70] sm:$0xff]   ;;  %v1319_v5 = vld [vmem:[%s2084_s3 + $0x68] sm:$0xff]  }
   0x2   :  { %v1316_v2 = vld [vmem:[%s2084_s3 + $0x38] sm:$0xff]   ;;  %1184 = vmatprep.subr.bf16.mxu0 %v1315_v0  ;;  %1296 = vmatprep.subr.bf16.mxu1 %v1315_v0  ;;  %v1318_v4 = vld [vmem:[%s2084_s3 + $0x30] sm:$0xff]   ;;  %v1320_v6 = vld [vmem:[%s2084_s3 + $0x28] sm:$0xff]  }
   0x3   :  { %1185 = vmatpush3.bf16.msra.mxu0 %v1316_v2  ;;  %1304 = vmatpush3.bf16.msra.mxu1 %v1316_v2  ;;  %v1321_v7 = vld [vmem:[%s2084_s3 + $0x60] sm:$0xff]   ;;  %v1323_v9 = vld [vmem:[%s2084_s3 + $0x58] sm:$0xff]   ;;  %v1325_v11 = vld [vmem:[%s2084_s3 + $0x50] sm:$0xff]  }
   0x4   :  { %1186 = vmatprep.subr.bf16.mxu0 %v1317_v3  ;;  %1297 = vmatprep.subr.bf16.mxu1 %v1317_v3  ;;  %v1322_v8 = vld [vmem:[%s2084_s3 + $0x20] sm:$0xff]   ;;  %v1324_v10 = vld [vmem:[%s2084_s3 + $0x18] sm:$0xff]   ;;  %v1326_v14 = vld [vmem:[%s2084_s3 + $0x10] sm:$0xff]  }
   0x5   :  { %v1333_v12 = vld [vmem:[%s2085_s0 + $0x4] ss:$8 sps:$4 sm:$0xff]   ;;  %v543_v18 = vld [vmem:[%s2086_s1 + $0x10] sm:$0xff]  ;;  %v544_v22 = vld [vmem:[%s2086_s1 + $0x18] sm:$0xff] }
   0x6   :  { %v1336_v13 = vld [vmem:[%s2085_s0 + $0x84] ss:$8 sps:$4 sm:$0xff]   ;;  %380 = vmatprep.mubr.bf16.mxu0 %v1333_v12  ;;  %vm575_vm0 = vcmp.gt.f32.partialorder %v543_v18, 0.0  ;;  %vm576_vm2 = vcmp.gt.f32.partialorder %v544_v22, 0.0  ;;  %v1331_v27 = vld [vmem:[%s2085_s0] ss:$8 sps:$4 sm:$0xff]  }
   0x7   :  { %1187 = vmatpush3.bf16.msra.mxu0 %v1318_v4  ;;  %1305 = vmatpush3.bf16.msra.mxu1 %v1318_v4  ;;  %v1327_v15 = vld [vmem:[%s2084_s3 + $0x48] sm:$0xff]   ;;  %v1329_v17 = vld [vmem:[%s2084_s3 + $0x40] sm:$0xff]   ;;  %v607_v20 = vsel %vm575_vm0, 1, %v1443_v1  ;;  %v608_v29 = vsel %vm576_vm2, 1, %v1443_v1  ;;  %v1337_v31 = vld [vmem:[%s2085_s0 + $0x14] ss:$8 sps:$4 sm:$0xff]  }
   0x8   :  { %1188 = vmatprep.subr.bf16.mxu0 %v1319_v5  ;;  %1298 = vmatprep.subr.bf16.mxu1 %v1319_v5  ;;  %v1328_v16 = vld [vmem:[%s2084_s3 + $0x8] sm:$0xff]   ;;  %v541_v19 = vld [vmem:[%s2086_s1] sm:$0xff]  ;;  %v1339_v32 = vld [vmem:[%s2085_s0 + $0x94] ss:$8 sps:$4 sm:$0xff]  }
   0x9   :  { %444 = vmatprep.mubr.bf16.mxu1 %v1336_v13  ;;  %vm573_vm1 = vcmp.gt.f32.partialorder %v541_v19, 0.0  ;;  %v1330_v23 = vld [vmem:[%s2084_s3] sm:$0xff]   ;;  %v542_v24 = vld [vmem:[%s2086_s1 + $0x8] sm:$0xff]  ;;  %644 = vperm.xlu1 %1314, %v607_v20   ;;  %v548_v33 = vld [vmem:[%s2086_s1 + $0x38] sm:$0xff] }
   0xa   :  { %v605_v21 = vsel %vm573_vm1, 1, %v1443_v1  ;;  %vm574_vm3 = vcmp.gt.f32.partialorder %v542_v24, 0.0  ;;  %v546_v25 = vld [vmem:[%s2086_s1 + $0x28] sm:$0xff]  ;;  %v545_v26 = vld [vmem:[%s2086_s1 + $0x20] sm:$0xff]  ;;  %v547_v34 = vld [vmem:[%s2086_s1 + $0x30] sm:$0xff]  ;;  %vm580_vm6 = vcmp.gt.f32.partialorder %v548_v33, 0.0 }
   0xb   :  { %1189 = vmatpush3.bf16.msra.mxu0 %v1320_v6  ;;  %1306 = vmatpush3.bf16.msra.mxu1 %v1320_v6  ;;  %v1334_v28 = vld [vmem:[%s2085_s0 + $0x80] ss:$8 sps:$4 sm:$0xff]   ;;  %v606_v30 = vsel %vm574_vm3, 1, %v1443_v1  ;;  %vm578_vm4 = vcmp.gt.f32.partialorder %v546_v25, 0.0  ;;  %vm577_vm5 = vcmp.gt.f32.partialorder %v545_v26, 0.0  ;;  %vm579_vm7 = vcmp.gt.f32.partialorder %v547_v34, 0.0 }
   0xc   :  { %1190 = vmatprep.subr.bf16.mxu0 %v1321_v7  ;;  %1299 = vmatprep.subr.bf16.mxu1 %v1321_v7  ;;  %v610_v35 = vsel %vm578_vm4, 1, %v1443_v1  ;;  %v609_v36 = vsel %vm577_vm5, 1, %v1443_v1  ;;  %v550_v37 = vld [vmem:[%s2086_s1 + $0x48] sm:$0xff]  ;;  %v549_v38 = vld [vmem:[%s2086_s1 + $0x40] sm:$0xff]  ;;  %v1341_v39 = vld [vmem:[%s2085_s0 + $0x10] ss:$8 sps:$4 sm:$0xff]  }
   0xd   :  { %638 = vperm.xlu0 %1313, %v605_v21   ;;  %647 = vperm.xlu1 %1314, %v608_v29   ;;  %v1342_v40 = vld [vmem:[%s2085_s0 + $0x90] ss:$8 sps:$4 sm:$0xff]   ;;  %v1343_v41 = vld [vmem:[%s2085_s0 + $0x24] ss:$8 sps:$4 sm:$0xff]   ;;  %v612_v42 = vsel %vm580_vm6, 1, %v1443_v1  ;;  %v611_v43 = vsel %vm579_vm7, 1, %v1443_v1 }
   0xe   :  { %v1345_v44 = vld [vmem:[%s2085_s0 + $0xa4] ss:$8 sps:$4 sm:$0xff]   ;;  %vm582_vm8 = vcmp.gt.f32.partialorder %v550_v37, 0.0  ;;  %vm581_vm9 = vcmp.gt.f32.partialorder %v549_v38, 0.0  ;;  %v552_v45 = vld [vmem:[%s2086_s1 + $0x58] sm:$0xff]  ;;  %v551_v46 = vld [vmem:[%s2086_s1 + $0x50] sm:$0xff] }
   0xf   :  { %1191 = vmatpush3.bf16.msra.mxu0 %v1322_v8  ;;  %1307 = vmatpush3.bf16.msra.mxu1 %v1322_v8  ;;  %v614_v47 = vsel %vm582_vm8, 1, %v1443_v1  ;;  %v613_v48 = vsel %vm581_vm9, 1, %v1443_v1  ;;  %vm584_vm10 = vcmp.gt.f32.partialorder %v552_v45, 0.0  ;;  %vm583_vm11 = vcmp.gt.f32.partialorder %v551_v46, 0.0  ;;  %v554_v49 = vld [vmem:[%s2086_s1 + $0x68] sm:$0xff]  ;;  %v553_v50 = vld [vmem:[%s2086_s1 + $0x60] sm:$0xff] }
  0x10   :  { %1192 = vmatprep.subr.bf16.mxu0 %v1323_v9  ;;  %1300 = vmatprep.subr.bf16.mxu1 %v1323_v9  ;;  %v1347_v51 = vld [vmem:[%s2085_s0 + $0x20] ss:$8 sps:$4 sm:$0xff]   ;;  %v616_v53 = vsel %vm584_vm10, 1, %v1443_v1  ;;  %v615_v54 = vsel %vm583_vm11, 1, %v1443_v1  ;;  %v1349_v55 = vld [vmem:[%s2085_s0 + $0x34] ss:$8 sps:$4 sm:$0xff]  }
  0x11   :  { %641 = vperm.xlu0 %1313, %v606_v30   ;;  %653 = vperm.xlu1 %1314, %v610_v35   ;;  %v1348_v52 = vld [vmem:[%s2085_s0 + $0xa0] ss:$8 sps:$4 sm:$0xff]   ;;  %v1351_v56 = vld [vmem:[%s2085_s0 + $0xb4] ss:$8 sps:$4 sm:$0xff]   ;;  %vm586_vm12 = vcmp.gt.f32.partialorder %v554_v49, 0.0  ;;  %vm585_vm13 = vcmp.gt.f32.partialorder %v553_v50, 0.0 }
  0x12   :  { %v557_v57 = vld [vmem:[%s2086_s1 + $0x80] sm:$0xff]  ;;  %v555_v58 = vld [vmem:[%s2086_s1 + $0x70] sm:$0xff]  ;;  %v618_v59 = vsel %vm586_vm12, 1, %v1443_v1  ;;  %v617_v60 = vsel %vm585_vm13, 1, %v1443_v1  ;;  %v558_v62 = vld [vmem:[%s2086_s1 + $0x88] sm:$0xff] }
  0x13   :  { %1193 = vmatpush3.bf16.msra.mxu0 %v1324_v10  ;;  %1308 = vmatpush3.bf16.msra.mxu1 %v1324_v10  ;;  %vm589_vm14 = vcmp.gt.f32.partialorder %v557_v57, 0.0  ;;  %vm587_vm15 = vcmp.gt.f32.partialorder %v555_v58, 0.0  ;;  %v565_v61 = vld [vmem:[%s2086_s1 + $0xc0] sm:$0xff]  ;;  %v1353_v63 = vld [vmem:[%s2085_s0 + $0x30] ss:$8 sps:$4 sm:$0xff]   ;;  %vm590_vm1 = vcmp.gt.f32.partialorder %v558_v62, 0.0 }
  0x14   :  { %1194 = vmatprep.subr.bf16.mxu0 %v1325_v11  ;;  %1301 = vmatprep.subr.bf16.mxu1 %v1325_v11  ;;  %v1354_v0 = vld [vmem:[%s2085_s0 + $0xb0] ss:$8 sps:$4 sm:$0xff]   ;;  %v621_v2 = vsel %vm589_vm14, 1, %v1443_v1  ;;  %v619_v3 = vsel %vm587_vm15, 1, %v1443_v1  ;;  %v1355_v4 = vld [vmem:[%s2085_s0 + $0x44] ss:$8 sps:$4 sm:$0xff]  }
  0x15   :  { %650 = vperm.xlu0 %1313, %v609_v36   ;;  %659 = vperm.xlu1 %1314, %v612_v42   ;;  %v1357_v5 = vld [vmem:[%s2085_s0 + $0xc4] ss:$8 sps:$4 sm:$0xff]   ;;  %vm597_vm0 = vcmp.gt.f32.partialorder %v565_v61, 0.0  ;;  %v559_v6 = vld [vmem:[%s2086_s1 + $0x90] sm:$0xff]  ;;  %v622_v9 = vsel %vm590_vm1, 1, %v1443_v1  ;;  %v560_v10 = vld [vmem:[%s2086_s1 + $0x98] sm:$0xff] }
  0x16   :  { %v566_v7 = vld [vmem:[%s2086_s1 + $0xc8] sm:$0xff]  ;;  %v629_v8 = vsel %vm597_vm0, 1, %v1443_v1  ;;  %vm591_vm2 = vcmp.gt.f32.partialorder %v559_v6, 0.0  ;;  %v567_v11 = vld [vmem:[%s2086_s1 + $0xd0] sm:$0xff]  ;;  %vm592_vm4 = vcmp.gt.f32.partialorder %v560_v10, 0.0  ;;  %v561_v18 = vld [vmem:[%s2086_s1 + $0xa0] sm:$0xff] }
  0x17   :  { %1195 = vmatpush3.bf16.msra.mxu0 %v1326_v14  ;;  %1309 = vmatpush3.bf16.msra.mxu1 %v1326_v14  ;;  %vm598_vm3 = vcmp.gt.f32.partialorder %v566_v7, 0.0  ;;  %v1359_v12 = vld [vmem:[%s2085_s0 + $0x40] ss:$8 sps:$4 sm:$0xff]   ;;  %v623_v14 = vsel %vm591_vm2, 1, %v1443_v1  ;;  %vm599_vm5 = vcmp.gt.f32.partialorder %v567_v11, 0.0  ;;  %v568_v19 = vld [vmem:[%s2086_s1 + $0xd8] sm:$0xff] }
  0x18   :  { %1196 = vmatprep.subr.bf16.mxu0 %v1327_v15  ;;  %1302 = vmatprep.subr.bf16.mxu1 %v1327_v15  ;;  %v1360_v13 = vld [vmem:[%s2085_s0 + $0xc0] ss:$8 sps:$4 sm:$0xff]   ;;  %v630_v15 = vsel %vm598_vm3, 1, %v1443_v1  ;;  %v624_v20 = vsel %vm592_vm4, 1, %v1443_v1  ;;  %v631_v21 = vsel %vm599_vm5, 1, %v1443_v1  ;;  %vm593_vm6 = vcmp.gt.f32.partialorder %v561_v18, 0.0 }
  0x19   :  { %656 = vperm.xlu0 %1313, %v611_v43   ;;  %665 = vperm.xlu1 %1314, %v614_v47   ;;  %vm600_vm7 = vcmp.gt.f32.partialorder %v568_v19, 0.0  ;;  %v562_v22 = vld [vmem:[%s2086_s1 + $0xa8] sm:$0xff]  ;;  %v1365_v24 = vld [vmem:[%s2085_s0 + $0x50] ss:$8 sps:$4 sm:$0xff]   ;;  %v625_v26 = vsel %vm593_vm6, 1, %v1443_v1  ;;  %v989_v47 = vld [vmem:[%s2087_s2] sm:$0xff] }
  0x1a   :  { %v1366_v25 = vld [vmem:[%s2085_s0 + $0xd0] ss:$8 sps:$4 sm:$0xff]   ;;  %v1369_v29 = vld [vmem:[%s2085_s0 + $0xe4] ss:$8 sps:$4 sm:$0xff]   ;;  %vm594_vm8 = vcmp.gt.f32.partialorder %v562_v22, 0.0  ;;  %vm993_vm1 = vcmp.gt.f32.partialorder %v989_v47, 0.0 }
  0x1b   :  { %1197 = vmatpush3.bf16.msra.mxu0 %v1328_v16  ;;  %1310 = vmatpush3.bf16.msra.mxu1 %v1328_v16  ;;  %v1361_v16 = vld [vmem:[%s2085_s0 + $0x54] ss:$8 sps:$4 sm:$0xff]   ;;  %v1371_v36 = vld [vmem:[%s2085_s0 + $0x60] ss:$8 sps:$4 sm:$0xff]   ;;  %v1378_v49 = vld [vmem:[%s2085_s0 + $0xf0] ss:$8 sps:$4 sm:$0xff]  }
  0x1c   :  { %1198 = vmatprep.subr.bf16.mxu0 %v1329_v17  ;;  %1303 = vmatprep.subr.bf16.mxu1 %v1329_v17  ;;  %v1363_v17 = vld [vmem:[%s2085_s0 + $0xd4] ss:$8 sps:$4 sm:$0xff]   ;;  %v1372_v37 = vld [vmem:[%s2085_s0 + $0xe0] ss:$8 sps:$4 sm:$0xff]  }
  0x1d   :  { %662 = vperm.xlu0 %1313, %v613_v48   ;;  %671 = vperm.xlu1 %1314, %v616_v53   ;;  %v563_v30 = vld [vmem:[%s2086_s1 + $0xb0] sm:$0xff]  ;;  %v556_v34 = vld [vmem:[%s2086_s1 + $0x78] sm:$0xff]  ;;  %v990_v46 = vld [vmem:[%s2087_s2 + $0x8] sm:$0xff] }
  0x1e   :  { %vm595_vm10 = vcmp.gt.f32.partialorder %v563_v30, 0.0  ;;  %v571_v35 = vld [vmem:[%s2086_s1 + $0xf0] sm:$0xff]  ;;  %vm588_vm12 = vcmp.gt.f32.partialorder %v556_v34, 0.0  ;;  %v572_v42 = vld [vmem:[%s2086_s1 + $0xf8] sm:$0xff]  ;;  %vm994_vm0 = vcmp.gt.f32.partialorder %v990_v46, 0.0 }
  0x1f   :  { %1199 = vmatpush3.bf16.msra.mxu0 %v1330_v23  ;;  %1311 = vmatpush3.bf16.msra.mxu1 %v1330_v23  ;;  %v569_v23 = vld [vmem:[%s2086_s1 + $0xe0] sm:$0xff]  ;;  %v627_v38 = vsel %vm595_vm10, 1, %v1443_v1  ;;  %vm603_vm13 = vcmp.gt.f32.partialorder %v571_v35, 0.0  ;;  %v564_v43 = vld [vmem:[%s2086_s1 + $0xb8] sm:$0xff]  ;;  %vm604_vm14 = vcmp.gt.f32.partialorder %v572_v42, 0.0  ;;  %v991_v53 = vld [vmem:[%s2087_s2 + $0x10] sm:$0xff] }
  0x20   :  { %vm601_vm9 = vcmp.gt.f32.partialorder %v569_v23, 0.0  ;;  %v635_v45 = vsel %vm603_vm13, 1, %v1443_v1  ;;  %vm596_vm15 = vcmp.gt.f32.partialorder %v564_v43, 0.0  ;;  %v1377_v48 = vld [vmem:[%s2085_s0 + $0x70] ss:$8 sps:$4 sm:$0xff]   ;;  %v636_v50 = vsel %vm604_vm14, 1, %v1443_v1 }
  0x21   :  { %668 = vperm.xlu0 %1313, %v615_v54   ;;  %677 = vperm.xlu1 %1314, %v618_v59   ;;  %v633_v33 = vsel %vm601_vm9, 1, %v1443_v1  ;;  %v998_v54 = vsel %vm994_vm0, 1, %v1443_v1  ;;  %vm995_vm3 = vcmp.gt.f32.partialorder %v991_v53, 0.0 }
  0x22   :  { %381 = vmatmul.mubr.bf16.vlgmr.msra.gmra.mxu0 %v1331_v27  ;;  %445 = vmatmul.mubr.bf16.vlgmr.msra.gmra.mxu1 %v1334_v28  ;;  %v632_v27 = vsel %vm600_vm7, 1, %v1443_v1  ;;  %v1367_v28 = vld [vmem:[%s2085_s0 + $0x64] ss:$8 sps:$4 sm:$0xff]   ;;  %v999_v57 = vsel %vm995_vm3, 1, %v1443_v1 }
  0x23   :  { %388 = vmatprep.mubr.bf16.mxu0 %v1337_v31  ;;  %452 = vmatprep.mubr.bf16.mxu1 %v1339_v32  ;;  %v570_v31 = vld [vmem:[%s2086_s1 + $0xe8] sm:$0xff]  ;;  %v626_v32 = vsel %vm594_vm8, 1, %v1443_v1 }
  0x24   :  { %vm602_vm11 = vcmp.gt.f32.partialorder %v570_v31, 0.0 }
  0x25   :  { %674 = vperm.xlu0 %1313, %v617_v60   ;;  %686 = vperm.xlu1 %1314, %v621_v2  }
  0x29   :  { %680 = vperm.xlu0 %1313, %v619_v3   ;;  %710 = vperm.xlu1 %1314, %v629_v8  }
  0x2a   :  { %389 = vmatmul.mubr.bf16.gmra.mxu0 %v1341_v39  ;;  %453 = vmatmul.mubr.bf16.gmra.mxu1 %v1342_v40  ;;  %v634_v39 = vsel %vm602_vm11, 1, %v1443_v1  ;;  %v1373_v40 = vld [vmem:[%s2085_s0 + $0x74] ss:$8 sps:$4 sm:$0xff]   ;;  %vm1049_vm11 = vcmask 1041409  }
  0x2b   :  { %396 = vmatprep.mubr.bf16.mxu0 %v1343_v41  ;;  %460 = vmatprep.mubr.bf16.mxu1 %v1345_v44  ;;  %v1375_v41 = vld [vmem:[%s2085_s0 + $0xf4] ss:$8 sps:$4 sm:$0xff]   ;;  %v620_v44 = vsel %vm588_vm12, 1, %v1443_v1 }
  0x2d   :  { %689 = vperm.xlu0 %1313, %v622_v9   ;;  %692 = vperm.xlu1 %1314, %v623_v14  }
  0x31   :  { %713 = vperm.xlu0 %1313, %v630_v15   ;;  %695 = vperm.xlu1 %1314, %v624_v20  }
  0x32   :  { %397 = vmatmul.mubr.bf16.gmra.mxu0 %v1347_v51  ;;  %461 = vmatmul.mubr.bf16.gmra.mxu1 %v1348_v52  ;;  %v628_v51 = vsel %vm596_vm15, 1, %v1443_v1  ;;  %v992_v52 = vld [vmem:[%s2087_s2 + $0x18] sm:$0xff] }
  0x33   :  { %404 = vmatprep.mubr.bf16.mxu0 %v1349_v55  ;;  %468 = vmatprep.mubr.bf16.mxu1 %v1351_v56  ;;  %v997_v55 = vsel %vm993_vm1, 1, %v1443_v1  ;;  %vm996_vm2 = vcmp.gt.f32.partialorder %v992_v52, 0.0 }
  0x34   :  { %v1000_v56 = vsel %vm996_vm2, 1, %v1443_v1 }
  0x35   :  { %716 = vperm.xlu0 %1313, %v631_v21   ;;  %698 = vperm.xlu1 %1314, %v625_v26  }
  0x39   :  { %719 = vperm.xlu0 %1313, %v632_v27   ;;  %701 = vperm.xlu1 %1314, %v626_v32  }
  0x3a   :  { %405 = vmatmul.mubr.bf16.gmra.mxu0 %v1353_v63  ;;  %469 = vmatmul.mubr.bf16.gmra.mxu1 %v1354_v0 }
  0x3b   :  { %412 = vmatprep.mubr.bf16.mxu0 %v1355_v4  ;;  %476 = vmatprep.mubr.bf16.mxu1 %v1357_v5 }
  0x3d   :  { %722 = vperm.xlu0 %1313, %v633_v33   ;;  %704 = vperm.xlu1 %1314, %v627_v38  }
  0x41   :  { %725 = vperm.xlu0 %1313, %v634_v39   ;;  %683 = vperm.xlu1 %1314, %v620_v44  }
  0x42   :  { %413 = vmatmul.mubr.bf16.gmra.mxu0 %v1359_v12  ;;  %477 = vmatmul.mubr.bf16.gmra.mxu1 %v1360_v13  ;;  %v1787_v13 = vld [vmem:[%s2088_s4] ss:$0 sm:$0xff] }
  0x43   :  { %420 = vmatprep.mubr.bf16.mxu0 %v1361_v16  ;;  %484 = vmatprep.mubr.bf16.mxu1 %v1363_v17 }
  0x45   :  { %728 = vperm.xlu0 %1313, %v635_v45   ;;  %731 = vperm.xlu1 %1314, %v636_v50  }
  0x49   :  { %707 = vperm.xlu0 %1313, %v628_v51   ;;  %1005 = vperm.xlu1 %1314, %v998_v54  }
  0x4a   :  { %421 = vmatmul.mubr.bf16.gmra.mxu0 %v1365_v24  ;;  %485 = vmatmul.mubr.bf16.gmra.mxu1 %v1366_v25 }
  0x4b   :  { %428 = vmatprep.mubr.bf16.mxu0 %v1367_v28  ;;  %492 = vmatprep.mubr.bf16.mxu1 %v1369_v29 }
  0x4d   :  { %1002 = vperm.xlu0 %1313, %v997_v55   ;;  %1011 = vperm.xlu1 %1314, %v1000_v56  }
  0x51   :  { %1008 = vperm.xlu0 %1313, %v999_v57  }
  0x52   :  { %429 = vmatmul.mubr.bf16.gmra.mxu0 %v1371_v36  ;;  %493 = vmatmul.mubr.bf16.gmra.mxu1 %v1372_v37 }
  0x53   :  { %436 = vmatprep.mubr.bf16.mxu0 %v1373_v40  ;;  %500 = vmatprep.mubr.bf16.mxu1 %v1375_v41 }
  0x5a   :  { %437 = vmatmul.mubr.bf16.gmra.mxu0 %v1377_v48  ;;  %501 = vmatmul.mubr.bf16.gmra.mxu1 %v1378_v49 }
  0x84   :  { %v1766_v59 = vpop.permute.xlu1 %644 }
  0x85   :  { %vm735_vm8 = vcmp.eq.s32.totalorder %v1766_v59, 1 }
  0x88   :  { %v1764_v58 = vpop.permute.xlu0 %638  ;;  %v1770_v61 = vpop.permute.xlu1 %647 }
  0x89   :  { %vm733_vm4 = vcmp.eq.s32.totalorder %v1764_v58, 1  ;;  %vm736_vm10 = vcmp.eq.s32.totalorder %v1770_v61, 1 }
  0x8c   :  { %v1768_v60 = vpop.permute.xlu0 %641  ;;  %v1774_v63 = vpop.permute.xlu1 %653 }
  0x8d   :  { %vm734_vm6 = vcmp.eq.s32.totalorder %v1768_v60, 1  ;;  %vm738_vm12 = vcmp.eq.s32.totalorder %v1774_v63, 1 }
  0x90   :  { %v1772_v62 = vpop.permute.xlu0 %650  ;;  %v1778_v4 = vpop.permute.xlu1 %659 }
  0x91   :  { %vm737_vm14 = vcmp.eq.s32.totalorder %v1772_v62, 1  ;;  %vm740_vm2 = vcmp.eq.s32.totalorder %v1778_v4, 1 }
  0x94   :  { %v1776_v0 = vpop.permute.xlu0 %656  ;;  %v1782_v12 = vpop.permute.xlu1 %665 }
  0x95   :  { %vm739_vm15 = vcmp.eq.s32.totalorder %v1776_v0, 1 }
  0x98   :  { %v1780_v8 = vpop.permute.xlu0 %662  ;;  %v1794_v27 = vpop.permute.xlu1 %671 }
  0x99   :  { %vm741_vm3 = vcmp.eq.s32.totalorder %v1780_v8, 1 }
  0x9c   :  { %v1790_v22 = vpop.permute.xlu0 %668  ;;  %v1799_v38 = vpop.permute.xlu1 %677 }
  0x9d   :  { %2098 = vst [vmem:[#allocation3_spill] sm:$0xff] %v1799_v38 }
  0xa0   :  { %v1797_v35 = vpop.permute.xlu0 %674  ;;  %v687_v49 = vpop.permute.xlu1 %686 }
  0xa1   :  { %2097 = vst [vmem:[#allocation2_spill] sm:$0xff] %v1797_v35  ;;  %vm749_vm5 = vcmp.eq.s32.totalorder %v687_v49, 1 }
  0xa4   :  { %v1807_v45 = vpop.permute.xlu0 %680  ;;  %v1825_v58 = vpop.permute.xlu1 %710 }
  0xa5   :  { %2099 = vst [vmem:[#allocation4_spill] sm:$0xff] %v1807_v45  ;;  %2100 = vst [vmem:[#allocation5_spill] sm:$0xff] %v1825_v58 }
  0xe2   :  { %v1200_v2 = vpop.f32.mrf.mxu0  ;;  %v1248_v3 = vpop.f32.mrf.mxu1 }
  0xe4   :  { %v1201_v1 = vpop.f32.mrf.mxu0  ;;  %v1249_v5 = vpop.f32.mrf.mxu1 }
  0xe5   :  { %v1202_v9 = vadd.f32 %v1201_v1, %v1200_v2  ;;  %v1250_v15 = vadd.f32 %v1249_v5, %v1248_v3  ;;  %v690_v3 = vpop.permute.xlu0 %689 }
  0xe6   :  { %v1203_v6 = vpop.f32.mrf.mxu0  ;;  %v1251_v7 = vpop.f32.mrf.mxu1  ;;  %vm750_vm7 = vcmp.eq.s32.totalorder %v690_v3, 1 }
  0xe7   :  { %v383_v19 = vadd.f32 %v1202_v9, %v1787_v13  ;;  %v447_v24 = vadd.f32 %v1250_v15, %v1787_v13 }
  0xe8   :  { %v1204_v10 = vpop.f32.mrf.mxu0  ;;  %v1252_v11 = vpop.f32.mrf.mxu1 }
  0xe9   :  { %v1205_v14 = vadd.f32 %v1204_v10, %v1203_v6  ;;  %v1253_v18 = vadd.f32 %v1252_v11, %v1251_v7  ;;  %1379 = vtanh.f32 %v383_v19 }
  0xea   :  { %v1206_v16 = vpop.f32.mrf.mxu0  ;;  %v1254_v17 = vpop.f32.mrf.mxu1 }
  0xeb   :  { %v386_v23 = vadd.f32 %v1205_v14, %v1787_v13  ;;  %v450_v28 = vadd.f32 %v1253_v18, %v1787_v13 }
  0xec   :  { %v1207_v20 = vpop.f32.mrf.mxu0  ;;  %v1255_v21 = vpop.f32.mrf.mxu1 }
  0xed   :  { %1381 = vtanh.f32 %v386_v23  ;;  %v1208_v31 = vadd.f32 %v1207_v20, %v1206_v16  ;;  %v1256_v32 = vadd.f32 %v1255_v21, %v1254_v17  ;;  %v1833_v23 = vpop.permute.xlu0 %713 }
  0xee   :  { %v1209_v25 = vpop.f32.mrf.mxu0  ;;  %v1257_v26 = vpop.f32.mrf.mxu1  ;;  %1383 = vtanh.f32 %v447_v24  ;;  %2101 = vst [vmem:[#allocation6_spill] sm:$0xff] %v1833_v23 }
  0xef   :  { %1385 = vtanh.f32 %v450_v28  ;;  %v391_v39 = vadd.f32 %v1208_v31, %v1787_v13  ;;  %v455_v40 = vadd.f32 %v1256_v32, %v1787_v13 }
  0xf0   :  { %v1210_v29 = vpop.f32.mrf.mxu0  ;;  %v1258_v30 = vpop.f32.mrf.mxu1 }
  0xf1   :  { %1387 = vtanh.f32 %v391_v39  ;;  %v1211_v46 = vadd.f32 %v1210_v29, %v1209_v25  ;;  %v1259_v50 = vadd.f32 %v1258_v30, %v1257_v26 }
  0xf2   :  { %v1212_v33 = vpop.f32.mrf.mxu0  ;;  %v1260_v34 = vpop.f32.mrf.mxu1  ;;  %1389 = vtanh.f32 %v455_v40 }
  0xf3   :  { %v394_v54 = vadd.f32 %v1211_v46, %v1787_v13  ;;  %v458_v6 = vadd.f32 %v1259_v50, %v1787_v13 }
  0xf4   :  { %v1213_v36 = vpop.f32.mrf.mxu0  ;;  %v1261_v37 = vpop.f32.mrf.mxu1 }
  0xf5   :  { %1391 = vtanh.f32 %v394_v54  ;;  %v1214_v11 = vadd.f32 %v1213_v36, %v1212_v33  ;;  %v1262_v26 = vadd.f32 %v1261_v37, %v1260_v34  ;;  %v693_v36 = vpop.permute.xlu1 %692  ;;  %v1852_v54 = vpop.permute.xlu0 %716 }
  0xf6   :  { %v1215_v41 = vpop.f32.mrf.mxu0  ;;  %v1803_v42 = vpop.f32.mrf.mxu1  ;;  %1393 = vtanh.f32 %v458_v6  ;;  %vm751_vm9 = vcmp.eq.s32.totalorder %v693_v36, 1  ;;  %2102 = vst [vmem:[#allocation7_spill] sm:$0xff] %v1852_v54 }
  0xf7   :  { %v1380_v53 = vpop.eup %1379  ;;  %v399_v25 = vadd.f32 %v1214_v11, %v1787_v13  ;;  %v463_v37 = vadd.f32 %v1262_v26, %v1787_v13 }
  0xf8   :  { %v1216_v43 = vpop.f32.mrf.mxu0  ;;  %v1805_v44 = vpop.f32.mrf.mxu1  ;;  %v765_v5 = vsel %vm733_vm4, %v1380_v53, -3.4028235e+38  ;;  %vm742_vm4 = vcmp.eq.s32.totalorder %v1782_v12, 1 }
  0xf9   :  { %v797_v17 = vrot.slane %v765_v5, 4  ;;  %v1217_v19 = vadd.f32 %v1216_v43, %v1215_v41  ;;  %1395 = vtanh.f32 %v399_v25 }
  0xfa   :  { %v1218_v47 = vpop.f32.mrf.mxu0  ;;  %v1809_v48 = vpop.f32.mrf.mxu1 }
  0xfb   :  { %v1382_v55 = vpop.eup %1381  ;;  %v798_v39 = vmax.f32 %v765_v5, %v797_v17  ;;  %v402_v41 = vadd.f32 %v1217_v19, %v1787_v13  ;;  %v1265_v17 = vadd.f32 %v1805_v44, %v1803_v42  ;;  %v696_v19 = vpop.permute.xlu1 %695 }
  0xfc   :  { %v1219_v51 = vpop.f32.mrf.mxu0  ;;  %v1811_v52 = vpop.f32.mrf.mxu1  ;;  %v766_v10 = vsel %vm734_vm6, %v1382_v55, -3.4028235e+38  ;;  %vm752_vm13 = vcmp.eq.s32.totalorder %v696_v19, 1  ;;  %vm743_vm6 = vcmp.eq.s32.totalorder %v1790_v22, 1 }
  0xfd   :  { %v1384_v2 = vpop.eup %1383  ;;  %v803_v18 = vrot.slane %v766_v10, 4  ;;  %v1220_v30 = vadd.f32 %v1219_v51, %v1218_v47  ;;  %v799_v55 = vrot.slane %v798_v39, 2  ;;  %1397 = vtanh.f32 %v402_v41  ;;  %v1873_v44 = vpop.permute.xlu0 %719 }
  0xfe   :  { %v1815_v56 = vpop.f32.mrf.mxu0  ;;  %v1817_v57 = vpop.f32.mrf.mxu1  ;;  %v781_v14 = vsel %vm749_vm5, %v1384_v2, -3.4028235e+38  ;;  %1399 = vtanh.f32 %v463_v37  ;;  %v1268_v25 = vadd.f32 %v1811_v52, %v1809_v48  ;;  %2103 = vst [vmem:[#allocation8_spill] sm:$0xff] %v1873_v44  ;;  %v466_v48 = vadd.f32 %v1265_v17, %v1787_v13 }
  0xff   :  { %v1386_v1 = vpop.eup %1385  ;;  %v893_v24 = vrot.slane %v781_v14, 4  ;;  %v804_v40 = vmax.f32 %v766_v10, %v803_v18  ;;  %v407_v51 = vadd.f32 %v1220_v30, %v1787_v13 }
 0x100   :  { %v1821_v7 = vpop.f32.mrf.mxu0  ;;  %v1823_v9 = vpop.f32.mrf.mxu1  ;;  %v782_v60 = vsel %vm750_vm7, %v1386_v1, -3.4028235e+38  ;;  %vm1051_vm7 = vcmask 1042434  }
 0x101   :  { %v1388_v28 = vpop.eup %1387  ;;  %v899_v29 = vrot.slane %v782_v60, 4  ;;  %v894_v34 = vmax.f32 %v781_v14, %v893_v24  ;;  %v805_v2 = vrot.slane %v804_v40, 2  ;;  %1401 = vtanh.f32 %v407_v51 }
 0x102   :  { %v1827_v15 = vpop.f32.mrf.mxu0  ;;  %v1829_v16 = vpop.f32.mrf.mxu1  ;;  %v767_v49 = vsel %vm735_vm8, %v1388_v28, -3.4028235e+38  ;;  %v800_v24 = vmax.f32 %v798_v39, %v799_v55  ;;  %v1223_v28 = vadd.f32 %v1821_v7, %v1815_v56  ;;  %1403 = vtanh.f32 %v466_v48 }
 0x103   :  { %v1390_v33 = vpop.eup %1389  ;;  %v900_v47 = vmax.f32 %v782_v60, %v899_v29  ;;  %v809_v5 = vrot.slane %v767_v49, 4  ;;  %v895_v11 = vrot.slane %v894_v34, 2  ;;  %v806_v26 = vmax.f32 %v804_v40, %v805_v2 }
 0x104   :  { %v1225_v20 = vpop.f32.mrf.mxu0  ;;  %v1831_v21 = vpop.f32.mrf.mxu1  ;;  %v783_v50 = vsel %vm751_vm9, %v1390_v33, -3.4028235e+38  ;;  %v801_v7 = vrot.slane %v800_v24, 1  ;;  %v471_v40 = vadd.f32 %v1268_v25, %v1787_v13  ;;  %vm744_vm8 = vcmp.eq.s32.totalorder %v1794_v27, 1 }
 0x105   :  { %v905_v6 = vrot.slane %v783_v50, 4  ;;  %v1392_v10 = vpop.eup %1391  ;;  %v901_v14 = vrot.slane %v900_v47, 2  ;;  %v810_v33 = vmax.f32 %v767_v49, %v809_v5  ;;  %v896_v41 = vmax.f32 %v894_v34, %v895_v11  ;;  %v1891_v25 = vpop.permute.xlu0 %722 }
 0x106   :  { %v1836_v31 = vpop.f32.mrf.mxu0  ;;  %v1838_v32 = vpop.f32.mrf.mxu1  ;;  %v768_v39 = vsel %vm736_vm10, %v1392_v10, -3.4028235e+38  ;;  %v1226_v61 = vadd.f32 %v1225_v20, %v1827_v15  ;;  %v807_v51 = vrot.slane %v806_v26, 1  ;;  %v410_v34 = vadd.f32 %v1223_v28, %v1787_v13 }
 0x107   :  { %v1394_v42 = vpop.eup %1393  ;;  %v906_v36 = vmax.f32 %v783_v50, %v905_v6  ;;  %v902_v37 = vmax.f32 %v900_v47, %v901_v14  ;;  %v815_v49 = vrot.slane %v768_v39, 4  ;;  %v699_v15 = vpop.permute.xlu1 %698  ;;  %v811_v20 = vrot.slane %v810_v33, 2 }
 0x108   :  { %v1842_v43 = vpop.f32.mrf.mxu0  ;;  %v1844_v46 = vpop.f32.mrf.mxu1  ;;  %v784_v50 = vsel %vm752_vm13, %v1394_v42, -3.4028235e+38  ;;  %v897_v5 = vrot.slane %v896_v41, 1  ;;  %v415_v10 = vadd.f32 %v1226_v61, %v1787_v13  ;;  %vm753_vm0 = vcmp.eq.s32.totalorder %v699_v15, 1 }
 0x109   :  { %v907_v55 = vrot.slane %v906_v36, 2  ;;  %v1396_v2 = vpop.eup %1395  ;;  %v903_v6 = vrot.slane %v902_v37, 1  ;;  %v911_v17 = vrot.slane %v784_v50, 4  ;;  %1405 = vtanh.f32 %v471_v40 }
 0x10a   :  { %v1848_v53 = vpop.f32.mrf.mxu0  ;;  %v1850_v59 = vpop.f32.mrf.mxu1  ;;  %v1229_v19 = vadd.f32 %v1842_v43, %v1836_v31  ;;  %v802_v28 = vmax.f32 %v800_v24, %v801_v7  ;;  %v808_v42 = vmax.f32 %v806_v26, %v807_v51  ;;  %v816_v44 = vmax.f32 %v768_v39, %v815_v49 }
 0x10b   :  { %1407 = vtanh.f32 %v410_v34  ;;  %v1398_v54 = vpop.eup %1397  ;;  %v812_v48 = vmax.f32 %v810_v33, %v811_v20  ;;  %v908_v38 = vmax.f32 %v906_v36, %v907_v55  ;;  %v1896_v40 = vmax.f32 %v896_v41, %v897_v5 }
 0x10c   :  { %v1854_v3 = vpop.f32.mrf.mxu0  ;;  %v1856_v1 = vpop.f32.mrf.mxu1  ;;  %v418_v61 = vadd.f32 %v1229_v19, %v1787_v13  ;;  %v1898_v35 = vmax.f32 %v902_v37, %v903_v6  ;;  %v769_v31 = vsel %vm737_vm14, %v1396_v2, -3.4028235e+38  ;;  %1409 = vtanh.f32 %v415_v10 }
 0x10d   :  { %v1232_v23 = vadd.f32 %v1854_v3, %v1848_v53  ;;  %v1400_v58 = vpop.eup %1399  ;;  %v912_v33 = vmax.f32 %v784_v50, %v911_v17  ;;  %v1271_v36 = vadd.f32 %v1823_v9, %v1817_v57  ;;  %v702_v3 = vpop.permute.xlu1 %701  ;;  %v1908_v39 = vsel %vm1049_vm11, %v808_v42, %v802_v28 }
 0x10e   :  { %v1860_v60 = vpop.f32.mrf.mxu0  ;;  %v1862_v18 = vpop.f32.mrf.mxu1  ;;  %1411 = vtanh.f32 %v418_v61  ;;  %v817_v41 = vrot.slane %v816_v44, 2  ;;  %v770_v62 = vsel %vm738_vm12, %v1398_v54, -3.4028235e+38  ;;  %vm754_vm1 = vcmp.eq.s32.totalorder %v702_v3, 1 }
 0x10f   :  { %v1402_v26 = vpop.eup %1401  ;;  %v423_v53 = vadd.f32 %v1232_v23, %v1787_v13  ;;  %v813_v7 = vrot.slane %v812_v48, 1  ;;  %v909_v51 = vrot.slane %v908_v38, 1  ;;  %v821_v49 = vrot.slane %v769_v31, 4  ;;  %v1914_v9 = vpop.permute.xlu0 %725 }
 0x110   :  { %v1869_v29 = vpop.f32.mrf.mxu0  ;;  %v1871_v30 = vpop.f32.mrf.mxu1  ;;  %v785_v23 = vsel %vm753_vm0, %v1400_v58, -3.4028235e+38  ;;  %v771_v50 = vsel %vm739_vm15, %v1402_v26, -3.4028235e+38  ;;  %v1274_v63 = vadd.f32 %v1831_v21, %v1829_v16  ;;  %v1277_v20 = vadd.f32 %v1844_v46, %v1838_v32 }
 0x111   :  { %v1235_v37 = vadd.f32 %v1869_v29, %v1860_v60  ;;  %1413 = vtanh.f32 %v423_v53  ;;  %v827_v60 = vrot.slane %v770_v62, 4  ;;  %v474_v29 = vadd.f32 %v1271_v36, %v1787_v13  ;;  %v705_v10 = vpop.permute.xlu1 %704 }
 0x112   :  { %v1877_v52 = vpop.f32.mrf.mxu0  ;;  %v1879_v56 = vpop.f32.mrf.mxu1  ;;  %v818_v58 = vmax.f32 %v816_v44, %v817_v41  ;;  %v913_v55 = vrot.slane %v912_v33, 2  ;;  %v822_v16 = vmax.f32 %v769_v31, %v821_v49  ;;  %v917_v21 = vrot.slane %v785_v23, 4 }
 0x113   :  { %v426_v54 = vadd.f32 %v1235_v37, %v1787_v13  ;;  %v833_v2 = vrot.slane %v771_v50, 4  ;;  %v1930_v17 = vmax.f32 %v812_v48, %v813_v7  ;;  %v1932_v32 = vmax.f32 %v908_v38, %v909_v51  ;;  %v1941_v38 = vpop.permute.xlu0 %728 }
 0x114   :  { %v1237_v47 = vpop.f32.mrf.mxu0  ;;  %v1887_v11 = vpop.f32.mrf.mxu1  ;;  %v479_v46 = vadd.f32 %v1274_v63, %v1787_v13  ;;  %vm755_vm5 = vcmp.eq.s32.totalorder %v705_v10, 1  ;;  %v1283_v19 = vadd.f32 %v1871_v30, %v1862_v18  ;;  %v1943_v42 = vmax.f32 %v912_v33, %v913_v55 }
 0x115   :  { %v1238_v15 = vadd.f32 %v1237_v47, %v1877_v52  ;;  %1415 = vtanh.f32 %v426_v54  ;;  %v1404_v52 = vpop.eup %1403  ;;  %v828_v47 = vmax.f32 %v770_v62, %v827_v60  ;;  %v819_v61 = vrot.slane %v818_v58, 1 }
 0x116   :  { %v1239_v14 = vpop.f32.mrf.mxu0  ;;  %v1902_v43 = vpop.f32.mrf.mxu1  ;;  %1417 = vtanh.f32 %v474_v29  ;;  %v823_v31 = vrot.slane %v822_v16, 2  ;;  %v1946_v26 = vmax.f32 %v785_v23, %v917_v21  ;;  %v834_v36 = vmax.f32 %v771_v50, %v833_v2 }
 0x117   :  { %v431_v5 = vadd.f32 %v1238_v15, %v1787_v13  ;;  %v1406_v28 = vpop.eup %1405  ;;  %v786_v18 = vsel %vm754_vm1, %v1404_v52, -3.4028235e+38  ;;  %v1286_v33 = vadd.f32 %v1887_v11, %v1879_v56  ;;  %v829_v62 = vrot.slane %v828_v47, 2  ;;  %v708_v54 = vpop.permute.xlu0 %707 }
 0x118   :  { %v1240_v45 = vpop.f32.mrf.mxu0  ;;  %v1288_v34 = vpop.f32.mrf.mxu1  ;;  %v490_v37 = vadd.f32 %v1283_v19, %v1787_v13  ;;  %vm1053_vm9 = vcmask 1043459   ;;  %v820_v23 = vmax.f32 %v818_v58, %v819_v61  ;;  %v824_v50 = vmax.f32 %v822_v16, %v823_v31  ;;  %v2105_v16 = vld [vmem:[#allocation5_spill] sm:$0xff] }
 0x119   :  { %v1241_v0 = vadd.f32 %v1240_v45, %v1239_v14  ;;  %v1280_v45 = vadd.f32 %v1856_v1, %v1850_v59  ;;  %v482_v14 = vadd.f32 %v1277_v20, %v1787_v13  ;;  %1419 = vtanh.f32 %v431_v5  ;;  %v1408_v48 = vpop.eup %1407 }
 0x11a   :  { %v1242_v24 = vpop.f32.mrf.mxu0  ;;  %v1290_v44 = vpop.f32.mrf.mxu1  ;;  %1421 = vtanh.f32 %v479_v46  ;;  %v1289_v7 = vadd.f32 %v1288_v34, %v1902_v43  ;;  %v772_v3 = vsel %vm740_vm2, %v1408_v48, -3.4028235e+38  ;;  %v835_v56 = vrot.slane %v834_v36, 2  ;;  %v2104_v34 = vld [vmem:[#allocation2_spill] sm:$0xff] }
 0x11b   :  { %v434_v59 = vadd.f32 %v1241_v0, %v1787_v13  ;;  %v487_v30 = vadd.f32 %v1280_v45, %v1787_v13  ;;  %1423 = vtanh.f32 %v482_v14  ;;  %v923_v60 = vrot.slane %v786_v18, 4 }
 0x11c   :  { %v1243_v57 = vpop.f32.mrf.mxu0  ;;  %v1291_v41 = vpop.f32.mrf.mxu1  ;;  %v495_v43 = vadd.f32 %v1286_v33, %v1787_v13  ;;  %vm745_vm10 = vcmp.eq.s32.totalorder %v2104_v34, 1  ;;  %vm756_vm12 = vcmp.eq.s32.totalorder %v708_v54, 1  ;;  %vm1055_vm13 = vcmask 1044484  }
 0x11d   :  { %v1244_v1 = vadd.f32 %v1243_v57, %v1242_v24  ;;  %v1410_v24 = vpop.eup %1409  ;;  %1425 = vtanh.f32 %v434_v59  ;;  %v1292_v11 = vadd.f32 %v1291_v41, %v1290_v44  ;;  %v839_v4 = vrot.slane %v772_v3, 4  ;;  %v2107_v44 = vld [vmem:[#allocation3_spill] sm:$0xff] }
 0x11e   :  { %v1245_v6 = vpop.f32.mrf.mxu0  ;;  %v1412_v51 = vpop.eup %1411  ;;  %v773_v29 = vsel %vm741_vm3, %v1410_v24, -3.4028235e+38  ;;  %1427 = vtanh.f32 %v487_v30  ;;  %v498_v15 = vadd.f32 %v1289_v7, %v1787_v13  ;;  %v830_v58 = vmax.f32 %v828_v47, %v829_v62  ;;  %v2109_v24 = vld [vmem:[#allocation4_spill] sm:$0xff] }
 0x11f   :  { %v439_v49 = vadd.f32 %v1244_v1, %v1787_v13  ;;  %v1414_v63 = vpop.eup %1413  ;;  %v774_v20 = vsel %vm742_vm4, %v1412_v51, -3.4028235e+38  ;;  %1429 = vtanh.f32 %v490_v37  ;;  %v787_v55 = vsel %vm755_vm5, %v1406_v28, -3.4028235e+38  ;;  %v1293_v22 = vpop.f32.mrf.mxu1 }
 0x120   :  { %v1246_v53 = vpop.f32.mrf.mxu0  ;;  %vm757_vm14 = vcmp.eq.s32.totalorder %v2105_v16, 1  ;;  %vm1057_vm15 = vcmask 1045509   ;;  %v836_v21 = vmax.f32 %v834_v36, %v835_v56  ;;  %v845_v2 = vrot.slane %v773_v29, 4 }
 0x121   :  { %v1247_v57 = vadd.f32 %v1246_v53, %v1245_v6  ;;  %1431 = vtanh.f32 %v439_v49  ;;  %v775_v5 = vsel %vm743_vm6, %v1414_v63, -3.4028235e+38  ;;  %v503_v12 = vadd.f32 %v1292_v11, %v1787_v13  ;;  %v2106_v6 = vld [vmem:[#allocation6_spill] sm:$0xff]  ;;  %v2108_v53 = vld [vmem:[#allocation7_spill] sm:$0xff]  ;;  %v1294_v51 = vpop.f32.mrf.mxu1 }
 0x122   :  { %v1416_v0 = vpop.eup %1415  ;;  %vm758_vm0 = vcmp.eq.s32.totalorder %v2106_v6, 1  ;;  %v825_v46 = vrot.slane %v824_v50, 1  ;;  %v1972_v45 = vmax.f32 %v786_v18, %v923_v60  ;;  %vm1059_vm1 = vcmask 1046534  }
 0x123   :  { %v442_v8 = vadd.f32 %v1247_v57, %v1787_v13  ;;  %v851_v10 = vrot.slane %v774_v20, 4  ;;  %1433 = vtanh.f32 %v495_v43  ;;  %vm746_vm2 = vcmp.eq.s32.totalorder %v2107_v44, 1  ;;  %v1418_v19 = vpop.eup %1417 }
 0x124   :  { %v929_v52 = vrot.slane %v787_v55, 4  ;;  %v840_v47 = vmax.f32 %v772_v3, %v839_v4  ;;  %v776_v14 = vsel %vm744_vm8, %v1416_v0, -3.4028235e+38  ;;  %1435 = vtanh.f32 %v498_v15 }
 0x125   :  { %v1052_v28 = vsel %vm1051_vm7, %v1930_v17, %v1908_v39  ;;  %v831_v59 = vrot.slane %v830_v58, 1  ;;  %v857_v1 = vrot.slane %v775_v5, 4  ;;  %1437 = vtanh.f32 %v442_v8  ;;  %v2110_v39 = vld [vmem:[#allocation8_spill] sm:$0xff] }
 0x126   :  { %v1420_v48 = vpop.eup %1419  ;;  %v915_v61 = vrot.slane %v1943_v42, 1  ;;  %v837_v31 = vrot.slane %v836_v21, 1  ;;  %v846_v36 = vmax.f32 %v773_v29, %v845_v2  ;;  %1439 = vtanh.f32 %v503_v12 }
 0x127   :  { %vm759_vm3 = vcmp.eq.s32.totalorder %v2108_v53, 1  ;;  %v826_v27 = vmax.f32 %v824_v50, %v825_v46  ;;  %v919_v18 = vrot.slane %v1946_v26, 2  ;;  %v852_v30 = vmax.f32 %v774_v20, %v851_v10  ;;  %v1422_v41 = vpop.eup %1421 }
 0x128   :  { %v863_v33 = vrot.slane %v776_v14, 4  ;;  %vm747_vm4 = vcmp.eq.s32.totalorder %v2109_v24, 1  ;;  %vm760_vm5 = vcmp.eq.s32.totalorder %v2110_v39, 1  ;;  %v1054_v17 = vsel %vm1053_vm9, %v820_v23, %v1052_v28  ;;  %v1424_v3 = vpop.eup %1423  ;;  %v684_v23 = vpop.permute.xlu1 %683 }
 0x129   :  { %v925_v62 = vrot.slane %v1972_v45, 2  ;;  %v1987_v37 = vmax.f32 %v787_v55, %v929_v52  ;;  %v841_v7 = vrot.slane %v840_v47, 2  ;;  %v832_v49 = vmax.f32 %v830_v58, %v831_v59 }
 0x12a   :  { %v788_v57 = vsel %vm756_vm12, %v1418_v19, -3.4028235e+38  ;;  %v858_v50 = vmax.f32 %v775_v5, %v857_v1  ;;  %v777_v56 = vsel %vm745_vm10, %v1420_v48, -3.4028235e+38  ;;  %v1426_v11 = vpop.eup %1425  ;;  %v838_v63 = vmax.f32 %v836_v21, %v837_v31 }
 0x12b   :  { %v847_v60 = vrot.slane %v846_v36, 2  ;;  %v864_v29 = vmax.f32 %v776_v14, %v863_v33  ;;  %v869_v43 = vrot.slane %v777_v56, 4  ;;  %vm761_vm6 = vcmp.eq.s32.totalorder %v1891_v25, 1  ;;  %v1428_v58 = vpop.eup %1427 }
 0x12c   :  { %v1056_v4 = vsel %vm1055_vm13, %v826_v27, %v1054_v17  ;;  %v789_v20 = vsel %vm757_vm14, %v1422_v41, -3.4028235e+38  ;;  %v853_v15 = vrot.slane %v852_v30, 2  ;;  %v1295_v54 = vadd.f32 %v1294_v51, %v1293_v22  ;;  %v1430_v21 = vpop.eup %1429  ;;  %v2021_v53 = vpop.permute.xlu1 %731 }
 0x12d   :  { %vm762_vm8 = vcmp.eq.s32.totalorder %v1914_v9, 1  ;;  %vm748_vm12 = vcmp.eq.s32.totalorder %v684_v23, 1  ;;  %v1997_v34 = vmax.f32 %v840_v47, %v841_v7  ;;  %v935_v55 = vrot.slane %v788_v57, 4 }
 0x12e   :  { %v790_v8 = vsel %vm758_vm0, %v1424_v3, -3.4028235e+38  ;;  %v870_v0 = vmax.f32 %v777_v56, %v869_v43  ;;  %vm763_vm10 = vcmp.eq.s32.totalorder %v1941_v38, 1  ;;  %v1058_v2 = vsel %vm1057_vm15, %v832_v49, %v1056_v4  ;;  %v1432_v46 = vpop.eup %1431 }
 0x12f   :  { %v931_v16 = vrot.slane %v1987_v37, 2  ;;  %v859_v5 = vrot.slane %v858_v50, 2  ;;  %v778_v12 = vsel %vm746_vm2, %v1426_v11, -3.4028235e+38  ;;  %v2007_v10 = vsel %vm1059_vm1, %v838_v63, %v1058_v2 }
 0x130   :  { %v848_v52 = vmax.f32 %v846_v36, %v847_v60  ;;  %v941_v47 = vrot.slane %v789_v20, 4  ;;  %v865_v6 = vrot.slane %v864_v29, 2  ;;  %v854_v14 = vmax.f32 %v852_v30, %v853_v15  ;;  %v1434_v59 = vpop.eup %1433 }
 0x131   :  { %v947_v22 = vrot.slane %v790_v8, 4  ;;  %v871_v19 = vrot.slane %v870_v0, 2  ;;  %v875_v28 = vrot.slane %v778_v12, 4  ;;  %v843_v1 = vrot.slane %v1997_v34, 1  ;;  %v1436_v27 = vpop.eup %1435 }
 0x132   :  { %v2010_v48 = vmax.f32 %v788_v57, %v935_v55  ;;  %v791_v44 = vsel %vm759_vm3, %v1428_v58, -3.4028235e+38  ;;  %v506_v31 = vadd.f32 %v1295_v54, %v1787_v13  ;;  %v860_v33 = vmax.f32 %v858_v50, %v859_v5  ;;  %v1438_v17 = vpop.eup %1437 }
 0x133   :  { %v792_v36 = vsel %vm760_vm5, %v1430_v21, -3.4028235e+38  ;;  %v876_v41 = vmax.f32 %v778_v12, %v875_v28  ;;  %v779_v30 = vsel %vm747_vm4, %v1432_v46, -3.4028235e+38  ;;  %v849_v7 = vrot.slane %v848_v52, 1  ;;  %v1440_v57 = vpop.eup %1439  ;;  %v1006_v46 = vpop.permute.xlu1 %1005 }
 0x134   :  { %v2019_v51 = vmax.f32 %v789_v20, %v941_v47  ;;  %v866_v3 = vmax.f32 %v864_v29, %v865_v6  ;;  %v881_v49 = vrot.slane %v779_v30, 4  ;;  %v855_v56 = vrot.slane %v854_v14, 1  ;;  %v1003_v47 = vpop.permute.xlu0 %1002 }
 0x135   :  { %v948_v13 = vmax.f32 %v790_v8, %v947_v22  ;;  %v872_v11 = vmax.f32 %v870_v0, %v871_v19  ;;  %v877_v50 = vrot.slane %v876_v41, 2  ;;  %vm1061_vm14 = vcmask 1047559  }
 0x136   :  { %v953_v39 = vrot.slane %v791_v44, 4  ;;  %v959_v63 = vrot.slane %v792_v36, 4  ;;  %v793_v24 = vsel %vm761_vm6, %v1434_v59, -3.4028235e+38  ;;  %v882_v60 = vmax.f32 %v779_v30, %v881_v49 }
 0x137   :  { %v861_v43 = vrot.slane %v860_v33, 1  ;;  %v878_v4 = vmax.f32 %v876_v41, %v877_v50  ;;  %v794_v29 = vsel %vm762_vm8, %v1436_v27, -3.4028235e+38  ;;  %v780_v20 = vsel %vm748_vm12, %v1438_v17, -3.4028235e+38 }
 0x138   :  { %v867_v15 = vrot.slane %v866_v3, 1  ;;  %v883_v54 = vrot.slane %v882_v60, 2  ;;  %v795_v58 = vsel %vm763_vm10, %v1440_v57, -3.4028235e+38  ;;  %v887_v55 = vrot.slane %v780_v20, 4 }
 0x139   :  { %v856_v8 = vmax.f32 %v854_v14, %v855_v56  ;;  %v873_v0 = vrot.slane %v872_v11, 1  ;;  %v965_v21 = vrot.slane %v793_v24, 4  ;;  %1441 = vtanh.f32 %v506_v31 }
 0x13a   :  { %v879_v25 = vrot.slane %v878_v4, 1  ;;  %v971_v2 = vrot.slane %v794_v29, 4  ;;  %v884_v5 = vmax.f32 %v882_v60, %v883_v54  ;;  %v888_v12 = vmax.f32 %v780_v20, %v887_v55 }
 0x13b   :  { %v850_v9 = vmax.f32 %v848_v52, %v849_v7  ;;  %v862_v6 = vmax.f32 %v860_v33, %v861_v43  ;;  %v954_v23 = vmax.f32 %v791_v44, %v953_v39  ;;  %v977_v22 = vrot.slane %v795_v58, 4 }
 0x13c   :  { %vm1014_vm0 = vcmp.eq.s32.totalorder %v1006_v46, 1  ;;  %vm1013_vm2 = vcmp.eq.s32.totalorder %v1003_v47, 1  ;;  %v868_v19 = vmax.f32 %v866_v3, %v867_v15  ;;  %v960_v38 = vmax.f32 %v792_v36, %v959_v63 }
 0x13d   :  { %v885_v28 = vrot.slane %v884_v5, 1  ;;  %v889_v59 = vrot.slane %v888_v12, 2  ;;  %v844_v14 = vmax.f32 %v1997_v34, %v843_v1  ;;  %v949_v27 = vrot.slane %v948_v13, 2 }
 0x13e   :  { %v874_v31 = vmax.f32 %v872_v11, %v873_v0  ;;  %v966_v41 = vmax.f32 %v793_v24, %v965_v21  ;;  %vm764_vm3 = vcmp.eq.s32.totalorder %v2021_v53, 1  ;;  %v1063_v30 = vsel %vm1049_vm11, %v856_v8, %v850_v9 }
 0x13f   :  { %v880_v17 = vmax.f32 %v878_v4, %v879_v25  ;;  %v972_v52 = vmax.f32 %v794_v29, %v971_v2  ;;  %v890_v33 = vmax.f32 %v888_v12, %v889_v59  ;;  %v1064_v44 = vsel %vm1051_vm7, %v862_v6, %v1063_v30 }
 0x140   :  { %v955_v7 = vrot.slane %v954_v23, 2  ;;  %v886_v49 = vmax.f32 %v884_v5, %v885_v28  ;;  %v978_v3 = vmax.f32 %v795_v58, %v977_v22  ;;  %v943_v36 = vrot.slane %v2019_v51, 2 }
 0x141   :  { %v1065_v57 = vsel %vm1053_vm9, %v868_v19, %v1064_v44  ;;  %v961_v34 = vrot.slane %v960_v38, 2  ;;  %v891_v1 = vrot.slane %v890_v33, 1  ;;  %v1062_v56 = vsel %vm1061_vm14, %v844_v14, %v2007_v10 }
 0x142   :  { %v937_v11 = vrot.slane %v2010_v48, 2  ;;  %v1066_v50 = vsel %vm1055_vm13, %v874_v31, %v1065_v57  ;;  %v967_v39 = vrot.slane %v966_v41, 2  ;;  %v950_v63 = vmax.f32 %v948_v13, %v949_v27 }
 0x143   :  { %v1067_v24 = vsel %vm1057_vm15, %v880_v17, %v1066_v50  ;;  %v973_v60 = vrot.slane %v972_v52, 2  ;;  %v892_v43 = vmax.f32 %v890_v33, %v891_v1  ;;  %v920_v4 = vmax.f32 %v1946_v26, %v919_v18  ;;  %v1009_v1 = vpop.permute.xlu0 %1008 }
 0x144   :  { %v956_v29 = vmax.f32 %v954_v23, %v955_v7  ;;  %v1068_v20 = vsel %vm1059_vm1, %v886_v49, %v1067_v24  ;;  %v979_v15 = vrot.slane %v978_v3, 2  ;;  %v926_v10 = vmax.f32 %v1972_v45, %v925_v62 }
 0x145   :  { %v944_v54 = vmax.f32 %v2019_v51, %v943_v36  ;;  %v962_v58 = vmax.f32 %v960_v38, %v961_v34  ;;  %v1069_v13 = vsel %vm1061_vm14, %v892_v43, %v1068_v20  ;;  %v932_v55 = vmax.f32 %v1987_v37, %v931_v16  ;;  %v1012_v34 = vpop.permute.xlu1 %1011 }
 0x146   :  { %v1088_v8 = vsel %vm1013_vm2, %v1062_v56, 0.0  ;;  %v968_v26 = vmax.f32 %v966_v41, %v967_v39  ;;  %v1089_v18 = vsel %vm1014_vm0, %v1069_v13, 0.0  ;;  %v1442_v0 = vpop.eup %1441  ;;  %v938_v21 = vmax.f32 %v2010_v48, %v937_v11 }
 0x147   :  { %v951_v25 = vrot.slane %v950_v63, 1  ;;  %v974_v2 = vmax.f32 %v972_v52, %v973_v60  ;;  %v1176_v45 = vpack.c.bf16 %v1089_v18, %v1088_v8  ;;  %v921_v62 = vrot.slane %v920_v4, 1 }
 0x148   :  { %v957_v51 = vrot.slane %v956_v29, 1  ;;  %v980_v5 = vmax.f32 %v978_v3, %v979_v15  ;;  %v796_v12 = vsel %vm764_vm3, %v1442_v0, -3.4028235e+38  ;;  %v927_v9 = vrot.slane %v926_v10, 1 }
 0x149   :  { %v945_v6 = vrot.slane %v944_v54, 1  ;;  %v963_v37 = vrot.slane %v962_v58, 1  ;;  %1177 = vst [vmem:[%s2089_s5] sm:$0xff] %v1176_v45   ;;  %v983_v16 = vrot.slane %v796_v12, 4  ;;  %v1070_v48 = vsel %vm1049_vm11, %v1898_v35, %v1896_v40 }
 0x14a   :  { %v916_v46 = vmax.f32 %v1943_v42, %v915_v61  ;;  %v933_v47 = vrot.slane %v932_v55, 1  ;;  %v969_v23 = vrot.slane %v968_v26, 1  ;;  %v939_v53 = vrot.slane %v938_v21, 1 }
 0x14b   :  { %v952_v22 = vmax.f32 %v950_v63, %v951_v25  ;;  %v975_v19 = vrot.slane %v974_v2, 1  ;;  %v984_v38 = vmax.f32 %v796_v12, %v983_v16  ;;  %v1071_v28 = vsel %vm1051_vm7, %v1932_v32, %v1070_v48 }
 0x14c   :  { %v922_v59 = vmax.f32 %v920_v4, %v921_v62  ;;  %v958_v14 = vmax.f32 %v956_v29, %v957_v51  ;;  %v981_v27 = vrot.slane %v980_v5, 1  ;;  %v928_v31 = vmax.f32 %v926_v10, %v927_v9 }
 0x14d   :  { %v946_v41 = vmax.f32 %v944_v54, %v945_v6  ;;  %v964_v30 = vmax.f32 %v962_v58, %v963_v37  ;;  %v985_v35 = vrot.slane %v984_v38, 2  ;;  %v1072_v40 = vsel %vm1053_vm9, %v916_v46, %v1071_v28 }
 0x14e   :  { %v934_v17 = vmax.f32 %v932_v55, %v933_v47  ;;  %v970_v42 = vmax.f32 %v968_v26, %v969_v23  ;;  %v940_v61 = vmax.f32 %v938_v21, %v939_v53  ;;  %v976_v33 = vmax.f32 %v974_v2, %v975_v19 }
 0x14f   :  { %v1077_v52 = vsel %vm1049_vm11, %v952_v22, %v946_v41  ;;  %v986_v44 = vmax.f32 %v984_v38, %v985_v35  ;;  %v1073_v7 = vsel %vm1055_vm13, %v922_v59, %v1072_v40  ;;  %v982_v49 = vmax.f32 %v980_v5, %v981_v27 }
 0x150   :  { %v1078_v32 = vsel %vm1051_vm7, %v958_v14, %v1077_v52  ;;  %v1074_v3 = vsel %vm1057_vm15, %v928_v31, %v1073_v7  ;;  %vm1016_vm11 = vcmp.eq.s32.totalorder %v1012_v34, 1  ;;  %vm1015_vm7 = vcmp.eq.s32.totalorder %v1009_v1, 1 }
 0x151   :  { %v1079_v36 = vsel %vm1053_vm9, %v964_v30, %v1078_v32  ;;  %v987_v57 = vrot.slane %v986_v44, 1  ;;  %v1075_v56 = vsel %vm1059_vm1, %v934_v17, %v1074_v3 }
 0x152   :  { %v1080_v11 = vsel %vm1055_vm13, %v970_v42, %v1079_v36  ;;  %v1076_v50 = vsel %vm1061_vm14, %v940_v61, %v1075_v56 }
 0x153   :  { %v1081_v39 = vsel %vm1057_vm15, %v976_v33, %v1080_v11  ;;  %v988_v63 = vmax.f32 %v986_v44, %v987_v57  ;;  %v1090_v43 = vsel %vm1015_vm7, %v1076_v50, 0.0 }
 0x154   :  { %v1082_v24 = vsel %vm1059_vm1, %v982_v49, %v1081_v39 }
 0x155   :  { %v1083_v60 = vsel %vm1061_vm14, %v988_v63, %v1082_v24 }
 0x156   :  { %v1091_v4 = vsel %vm1016_vm11, %v1083_v60, 0.0 }
 0x157   :  { %v1181_v29 = vpack.c.bf16 %v1091_v4, %v1090_v43 }
 0x159   :  { %1183 = vst [vmem:[%s2089_s5 + $0x8] sm:$0xff] %v1181_v29  }

</bundles_post_ra>
